<compile_context>
chip_gen: v6e
topology: v6e:2x2x1
jax: 0.10.0
libtpu: 0.0.40
codegen_flags: <defaults>
</compile_context>

<pallas_src>
import functools

import jax
import jax.numpy as jnp
from jax.experimental import pallas as pl
from jax.experimental.pallas import tpu as pltpu


# ----------------------------- Pallas kernel --------------------------------
def _encoder_layer_kernel(
    src_ref,                     # (B*F, D)   f32, grid-invariant
    pe_ref,                      # (B*F, D)   f32, grid-invariant
    wqkv_ref, bqkv_ref,          # (1, D, 3*H*dkp) bf16, (1, 1, 3*H*dkp) f32
    wo_ref, bo_ref,              # (1, H*dkp, D) bf16, (1, 1, D) f32
    g1_ref, beta1_ref,           # (1, 1, D), (1, 1, D)   LayerNorm 1
    w1_ref, bf1_ref,             # (1, D, Dff) bf16, (1, 1, Dff) f32
    w2_ref, bf2_ref,             # (1, Dff, D) bf16, (1, 1, D) f32
    g2_ref, beta2_ref,           # (1, 1, D), (1, 1, D)   LayerNorm 2
    out_ref,                     # (B*F, D)   f32
    x_scr,                       # VMEM scratch (B*F, D) f32 — activation carry
    *,
    num_heads: int,
    dim_k_pad: int,
    batch: int,
    feature: int,
    eps: float = 1e-5,
):
    layer = pl.program_id(0)
    n_layers = pl.num_programs(0)

    # Positional-encoding add fused into the first grid step.
    @pl.when(layer == 0)
    def _():
        x_scr[...] = src_ref[...].astype(jnp.float32) + pe_ref[...].astype(jnp.float32)

    x = x_scr[...]
    rows, dim = x.shape
    H, dkp = num_heads, dim_k_pad

    # Cross-batch mask generated in-kernel (no (BF,BF) HBM operand / DMA).
    # Vector integer divide has no VPU instruction, so batch equality is tested
    # with per-boundary step functions (batch is static & small; at production
    # F/B restructure attention per-batch block-diagonal instead).
    same = None
    if batch > 1:
        ri = jax.lax.broadcasted_iota(jnp.int32, (rows, rows), 0)
        ci = jax.lax.broadcasted_iota(jnp.int32, (rows, rows), 1)
        for b in range(1, batch):
            t = b * feature
            eq = jnp.logical_not(jnp.logical_xor(ri >= t, ci >= t))
            same = eq if same is None else jnp.logical_and(same, eq)

    # ---- fused QKV projection: one (BF, D) @ (D, 3*H*dkp) bf16 matmul ----
    # (1/sqrt(dim_q) softmax scale pre-folded into the Q columns/bias.)
    x_lo = x.astype(jnp.bfloat16)
    qkv = jnp.dot(x_lo, wqkv_ref[0], preferred_element_type=jnp.float32) + bqkv_ref[0]

    wo = wo_ref[0]                                   # (H*dkp, D) bf16
    attn = jnp.zeros((rows, dim), jnp.float32)
    for h in range(H):                               # H is small & static
        # 128-lane-aligned per-head slices (dk padded to dkp with zero cols).
        q = qkv[:, h * dkp:(h + 1) * dkp]
        k = qkv[:, (H + h) * dkp:(H + h + 1) * dkp]
        v = qkv[:, (2 * H + h) * dkp:(2 * H + h + 1) * dkp]
        # scores = q @ k^T (padded columns are zero -> contribute nothing)
        s = jax.lax.dot_general(
            q.astype(jnp.bfloat16), k.astype(jnp.bfloat16),
            (((1,), (1,)), ((), ())), preferred_element_type=jnp.float32)
        if same is not None:
            s = jnp.where(same, s, jnp.float32(-1e30))   # mask cross-batch
        s = s - jnp.max(s, axis=-1, keepdims=True)
        p = jnp.exp(s)
        # approx reciprocal (EUP slot): ~1e-4 rel deviation vs exact softmax.
        p = p * pl.reciprocal(jnp.sum(p, axis=-1, keepdims=True), approx=True)
        head = jnp.dot(p.astype(jnp.bfloat16), v.astype(jnp.bfloat16),
                       preferred_element_type=jnp.float32)      # (BF, dkp)
        # Accumulate the output projection per head (no lane-shuffling concat;
        # Wo rows for padded lanes are zero).
        attn = attn + jnp.dot(head.astype(jnp.bfloat16),
                              wo[h * dkp:(h + 1) * dkp, :],
                              preferred_element_type=jnp.float32)
    attn = attn + bo_ref[0]

    # ---- residual + LayerNorm 1 (dropout == identity in eval) ----
    y = x + attn
    mu = jnp.mean(y, axis=-1, keepdims=True)
    var = jnp.mean((y - mu) * (y - mu), axis=-1, keepdims=True)
    y = (y - mu) * jax.lax.rsqrt(var + eps) * g1_ref[0] + beta1_ref[0]

    # ---- feed-forward: Linear -> ReLU -> Linear ----
    hdn = jnp.maximum(
        jnp.dot(y.astype(jnp.bfloat16), w1_ref[0],
                preferred_element_type=jnp.float32) + bf1_ref[0], 0.0)
    f = jnp.dot(hdn.astype(jnp.bfloat16), w2_ref[0],
                preferred_element_type=jnp.float32) + bf2_ref[0]

    # ---- residual + LayerNorm 2 ----
    z = y + f
    mu2 = jnp.mean(z, axis=-1, keepdims=True)
    var2 = jnp.mean((z - mu2) * (z - mu2), axis=-1, keepdims=True)
    x_new = (z - mu2) * jax.lax.rsqrt(var2 + eps) * g2_ref[0] + beta2_ref[0]

    x_scr[...] = x_new                               # carry to next layer

    @pl.when(layer == n_layers - 1)
    def _():
        out_ref[...] = x_new


# ----------------------------- parameter packing -----------------------------
def _pack_layer_params(layer_params, dim_k, dim_k_pad, weight_dtype=jnp.bfloat16):
    """Stack per-layer params; fuse per-head Q/K/V Linears into one
    (D, 3*H*dkp) projection with each head's dk columns zero-padded to a
    128-lane group, fold 1/sqrt(dim_q) into the Q columns, zero-pad the
    matching Wo rows, and cast matmul weights to bf16."""
    inv_scale = 1.0 / (float(dim_k) ** 0.5)          # dim_q == dim_k in the module
    pad = dim_k_pad - dim_k

    def pad_heads(w):                                # (H, D, dk) -> (D, H*dkp)
        H, D, _ = w.shape
        wp = jnp.pad(w, ((0, 0), (0, 0), (0, pad)))
        return jnp.transpose(wp, (1, 0, 2)).reshape(D, H * dim_k_pad)

    def pad_head_bias(b):                            # (H, 1, dk) -> (1, H*dkp)
        H = b.shape[0]
        bp = jnp.pad(b, ((0, 0), (0, 0), (0, pad)))
        return jnp.transpose(bp, (1, 0, 2)).reshape(1, H * dim_k_pad)

    def pad_wo(wo):                                  # (H*dk, D) -> (H*dkp, D)
        Hdk, D = wo.shape
        H = Hdk // dim_k
        wo3 = wo.reshape(H, dim_k, D)
        wo3 = jnp.pad(wo3, ((0, 0), (0, pad), (0, 0)))
        return wo3.reshape(H * dim_k_pad, D)

    cols = {k: [] for k in ("wqkv", "bqkv", "wo", "bo", "g1", "beta1",
                            "w1", "bf1", "w2", "bf2", "g2", "beta2")}
    for p in layer_params:
        cols["wqkv"].append(jnp.concatenate(
            [pad_heads(p["wq"]) * inv_scale, pad_heads(p["wk"]), pad_heads(p["wv"])],
            axis=1))
        cols["bqkv"].append(jnp.concatenate(
            [pad_head_bias(p["bq"]) * inv_scale, pad_head_bias(p["bk"]),
             pad_head_bias(p["bv"])], axis=1))
        cols["wo"].append(pad_wo(p["wo"]))
        cols["w1"].append(p["w1"])
        cols["w2"].append(p["w2"])
        for k in ("bo", "g1", "beta1", "bf1", "bf2", "g2", "beta2"):
            cols[k].append(p[k])

    def stack(name, dtype):
        return jnp.stack(cols[name], axis=0).astype(dtype)

    return (
        stack("wqkv", weight_dtype), stack("bqkv", jnp.float32),
        stack("wo", weight_dtype), stack("bo", jnp.float32),
        stack("g1", jnp.float32), stack("beta1", jnp.float32),
        stack("w1", weight_dtype), stack("bf1", jnp.float32),
        stack("w2", weight_dtype), stack("bf2", jnp.float32),
        stack("g2", jnp.float32), stack("beta2", jnp.float32),
    )


# ----------------------------- glue -------------------------------------------
def positional_encoding(feature, seq_len):
    """Matches _positional_encoding exactly (trunc-division exponent)."""
    pos = jnp.arange(feature, dtype=jnp.float32).reshape(1, -1, 1)
    dim = jnp.arange(seq_len, dtype=jnp.float32).reshape(1, 1, -1)
    phase = pos / (1000000.0 ** jnp.trunc(dim / seq_len))
    return jnp.where(dim.astype(jnp.int32) % 2 == 0, jnp.sin(phase), jnp.cos(phase))


@functools.partial(jax.jit, static_argnames=("num_heads", "dim_k"))
def encoder_forward(src, layer_params, *, num_heads, dim_k):
    """Encoder.forward: PE add + stack of encoder layers in one pallas_call,
    with the layer loop as a grid axis (weights streamed per layer)."""
    B, F, D = src.shape
    L = len(layer_params)
    BF = B * F
    dkp = max(128, ((dim_k + 127) // 128) * 128)     # lane-aligned per-head width

    # Positional encoding, pre-tiled over the batch (tiny, computed once).
    pe = positional_encoding(F, D)                   # (1, F, D)
    pe2 = jnp.broadcast_to(pe, (B, F, D)).reshape(BF, D).astype(jnp.float32)
    src2 = src.reshape(BF, D).astype(jnp.float32)

    packed = _pack_layer_params(layer_params, dim_k, dkp)

    def inv_spec(shape):                             # grid-invariant operand
        nd = len(shape)
        return pl.BlockSpec(shape, lambda l, _n=nd: (0,) * _n)

    def layer_spec(shape):                           # per-layer streamed operand
        nd = len(shape)
        return pl.BlockSpec((1,) + tuple(shape[1:]),
                            lambda l, _n=nd: (l,) + (0,) * (_n - 1))

    args = (src2, pe2) + packed
    in_specs = ([inv_spec(src2.shape), inv_spec(pe2.shape)]
                + [layer_spec(p.shape) for p in packed])

    kernel = functools.partial(
        _encoder_layer_kernel,
        num_heads=num_heads, dim_k_pad=dkp, batch=B, feature=F)

    out2 = pl.pallas_call(
        kernel,
        out_shape=jax.ShapeDtypeStruct((BF, D), jnp.float32),
        grid=(L,),                                   # layer loop -> streamed weights
        in_specs=in_specs,
        out_specs=inv_spec((BF, D)),
        scratch_shapes=[pltpu.VMEM((BF, D), jnp.float32)],
        compiler_params=pltpu.CompilerParams(
            dimension_semantics=("arbitrary",)),     # layers are sequential
    )(*args)

    return out2.reshape(B, F, D)


def init_layer_params(key, dim_model, num_heads, dim_k, dim_ff):
    ks = jax.random.split(key, 12)
    s = 0.1
    n = lambda k, shape: (jax.random.normal(k, shape, jnp.float32) * s)
    return {
        "wq": n(ks[0], (num_heads, dim_model, dim_k)),
        "bq": n(ks[1], (num_heads, 1, dim_k)),
        "wk": n(ks[2], (num_heads, dim_model, dim_k)),
        "bk": n(ks[3], (num_heads, 1, dim_k)),
        "wv": n(ks[4], (num_heads, dim_model, dim_k)),
        "bv": n(ks[5], (num_heads, 1, dim_k)),
        "wo": n(ks[6], (num_heads * dim_k, dim_model)),
        "bo": n(ks[7], (1, dim_model)),
        "g1": jnp.ones((1, dim_model), jnp.float32),
        "beta1": jnp.zeros((1, dim_model), jnp.float32),
        "w1": n(ks[8], (dim_model, dim_ff)),
        "bf1": n(ks[9], (1, dim_ff)),
        "w2": n(ks[10], (dim_ff, dim_model)),
        "bf2": n(ks[11], (1, dim_model)),
        "g2": jnp.ones((1, dim_model), jnp.float32),
        "beta2": jnp.zeros((1, dim_model), jnp.float32),
    }


if __name__ == "__main__":
    # Config consistent with the module:
    #   Encoder(num_layers=2, dim_model=8, num_heads=2, dim_feedforward=32)
    #   input src: (batch=2, feature=16, seq_len=dim_model=8)
    B, F, D = 2, 16, 8
    num_layers, num_heads, dim_ff = 2, 2, 32
    dim_k = max(D // num_heads, 1)          # dim_q == dim_k == 4

    root = jax.random.PRNGKey(0)
    kx, kp = jax.random.split(root)
    x = jax.random.normal(kx, (B, F, D), jnp.float32)

    layer_keys = jax.random.split(kp, num_layers)
    layer_params = [
        init_layer_params(layer_keys[i], D, num_heads, dim_k, dim_ff)
        for i in range(num_layers)
    ]

    out = encoder_forward(x, layer_params, num_heads=num_heads, dim_k=dim_k)
    out = jax.block_until_ready(out)
    assert out.shape == (B, F, D)
    assert bool(jnp.all(jnp.isfinite(out)))
    print("KERNEL_OK")
</pallas_src>

<mosaic_0001>
module attributes {stable_mosaic.version = 11 : i64} {
  func.func @_encoder_layer_kernel(%arg0: i32, %arg1: memref<32x8xf32, #tpu.memory_space<vmem>>, %arg2: memref<32x8xf32, #tpu.memory_space<vmem>>, %arg3: memref<1x8x768xbf16, #tpu.memory_space<vmem>>, %arg4: memref<1x1x768xf32, #tpu.memory_space<vmem>>, %arg5: memref<1x256x8xbf16, #tpu.memory_space<vmem>>, %arg6: memref<1x1x8xf32, #tpu.memory_space<vmem>>, %arg7: memref<1x1x8xf32, #tpu.memory_space<vmem>>, %arg8: memref<1x1x8xf32, #tpu.memory_space<vmem>>, %arg9: memref<1x8x32xbf16, #tpu.memory_space<vmem>>, %arg10: memref<1x1x32xf32, #tpu.memory_space<vmem>>, %arg11: memref<1x32x8xbf16, #tpu.memory_space<vmem>>, %arg12: memref<1x1x8xf32, #tpu.memory_space<vmem>>, %arg13: memref<1x1x8xf32, #tpu.memory_space<vmem>>, %arg14: memref<1x1x8xf32, #tpu.memory_space<vmem>>, %arg15: memref<32x8xf32, #tpu.memory_space<vmem>>, %arg16: memref<32x8xf32, #tpu.memory_space<vmem>>) attributes {dimension_semantics = [#tpu.dimension_semantics<arbitrary>], iteration_bounds = array<i64: 2>, scalar_prefetch = 0 : i64, scratch_operands = 1 : i64, tpu.core_type = #tpu.core_type<tc>, window_params = [{pipeline_mode = #tpu.pipeline_mode<synchronous>, transform_indices = @transform_0, window_bounds = array<i64: 32, 8>}, {pipeline_mode = #tpu.pipeline_mode<synchronous>, transform_indices = @transform_1, window_bounds = array<i64: 32, 8>}, {transform_indices = @transform_2, window_bounds = array<i64: 1, 8, 768>}, {transform_indices = @transform_3, window_bounds = array<i64: 1, 1, 768>}, {transform_indices = @transform_4, window_bounds = array<i64: 1, 256, 8>}, {transform_indices = @transform_5, window_bounds = array<i64: 1, 1, 8>}, {transform_indices = @transform_6, window_bounds = array<i64: 1, 1, 8>}, {transform_indices = @transform_7, window_bounds = array<i64: 1, 1, 8>}, {transform_indices = @transform_8, window_bounds = array<i64: 1, 8, 32>}, {transform_indices = @transform_9, window_bounds = array<i64: 1, 1, 32>}, {transform_indices = @transform_10, window_bounds = array<i64: 1, 32, 8>}, {transform_indices = @transform_11, window_bounds = array<i64: 1, 1, 8>}, {transform_indices = @transform_12, window_bounds = array<i64: 1, 1, 8>}, {transform_indices = @transform_13, window_bounds = array<i64: 1, 1, 8>}, {pipeline_mode = #tpu.pipeline_mode<synchronous>, transform_indices = @transform_14, window_bounds = array<i64: 32, 8>}]} {
    %c0_i32 = arith.constant 0 : i32
    %0 = arith.cmpi eq, %arg0, %c0_i32 : i32
    %1 = arith.extui %0 : i1 to i32
    %c0_i32_0 = arith.constant 0 : i32
    %2 = arith.cmpi ne, %1, %c0_i32_0 : i32
    scf.if %2 {
      %c0_69 = arith.constant 0 : index
      %c0_70 = arith.constant 0 : index
      %157 = vector.load %arg1[%c0_69, %c0_70] : memref<32x8xf32, #tpu.memory_space<vmem>>, vector<32x8xf32>
      %c0_71 = arith.constant 0 : index
      %c0_72 = arith.constant 0 : index
      %158 = vector.load %arg2[%c0_71, %c0_72] : memref<32x8xf32, #tpu.memory_space<vmem>>, vector<32x8xf32>
      %159 = arith.addf %157, %158 : vector<32x8xf32>
      %c0_73 = arith.constant 0 : index
      %c0_74 = arith.constant 0 : index
      %160 = vector.load %arg16[%c0_73, %c0_74] : memref<32x8xf32, #tpu.memory_space<vmem>>, vector<32x8xf32>
      tpu.vector_store %arg16[%c0_73, %c0_74], %159 {strides = array<i32>} : memref<32x8xf32, #tpu.memory_space<vmem>>, vector<32x8xf32>,
    } else {
    }
    %c0 = arith.constant 0 : index
    %c0_1 = arith.constant 0 : index
    %3 = vector.load %arg16[%c0, %c0_1] : memref<32x8xf32, #tpu.memory_space<vmem>>, vector<32x8xf32>
    %4 = tpu.iota {dimensions = array<i32: 0>} : vector<32x32xi32>
    %5 = tpu.iota {dimensions = array<i32: 1>} : vector<32x32xi32>
    %c16_i32 = arith.constant 16 : i32
    %6 = vector.broadcast %c16_i32 : i32 to vector<32x32xi32>
    %7 = arith.cmpi sge, %4, %6 : vector<32x32xi32>
    %c16_i32_2 = arith.constant 16 : i32
    %8 = vector.broadcast %c16_i32_2 : i32 to vector<32x32xi32>
    %9 = arith.cmpi sge, %5, %8 : vector<32x32xi32>
    %10 = arith.xori %7, %9 : vector<32x32xi1>
    %cst = arith.constant dense<true> : vector<32x32xi1>
    %11 = arith.xori %10, %cst : vector<32x32xi1>
    %12 = arith.truncf %3 : vector<32x8xf32> to vector<32x8xbf16>
    %c0_3 = arith.constant 0 : index
    %c0_4 = arith.constant 0 : index
    %c0_5 = arith.constant 0 : index
    %13 = vector.load %arg3[%c0_3, %c0_4, %c0_5] : memref<1x8x768xbf16, #tpu.memory_space<vmem>>, vector<1x8x768xbf16>
    %14 = vector.shape_cast %13 : vector<1x8x768xbf16> to vector<8x768xbf16>
    %cst_6 = arith.constant dense<0.000000e+00> : vector<32x768xf32>
    %15 = tpu.matmul %12, %14, %cst_6 {dimension_numbers = #tpu.dot_dimension_numbers<[1], [0], [0], [1], [0, 0, 1, 1], [], []>} : vector<32x8xbf16>, vector<8x768xbf16>, vector<32x768xf32> -> vector<32x768xf32>
    %c0_7 = arith.constant 0 : index
    %c0_8 = arith.constant 0 : index
    %c0_9 = arith.constant 0 : index
    %16 = vector.load %arg4[%c0_7, %c0_8, %c0_9] : memref<1x1x768xf32, #tpu.memory_space<vmem>>, vector<1x1x768xf32>
    %17 = vector.shape_cast %16 : vector<1x1x768xf32> to vector<1x768xf32>
    %18 = vector.broadcast %17 : vector<1x768xf32> to vector<32x768xf32>
    %19 = arith.addf %15, %18 : vector<32x768xf32>
    %c0_10 = arith.constant 0 : index
    %c0_11 = arith.constant 0 : index
    %c0_12 = arith.constant 0 : index
    %20 = vector.load %arg5[%c0_10, %c0_11, %c0_12] : memref<1x256x8xbf16, #tpu.memory_space<vmem>>, vector<1x256x8xbf16>
    %21 = vector.shape_cast %20 : vector<1x256x8xbf16> to vector<256x8xbf16>
    %cst_13 = arith.constant 0.000000e+00 : f32
    %22 = vector.broadcast %cst_13 : f32 to vector<32x8xf32>
    %23 = vector.extract_strided_slice %19 {offsets = [0, 0], sizes = [32, 128], strides = [1, 1]} : vector<32x768xf32> to vector<32x128xf32>
    %24 = vector.extract_strided_slice %19 {offsets = [0, 256], sizes = [32, 128], strides = [1, 1]} : vector<32x768xf32> to vector<32x128xf32>
    %25 = vector.extract_strided_slice %19 {offsets = [0, 512], sizes = [32, 128], strides = [1, 1]} : vector<32x768xf32> to vector<32x128xf32>
    %26 = arith.truncf %23 : vector<32x128xf32> to vector<32x128xbf16>
    %27 = arith.truncf %24 : vector<32x128xf32> to vector<32x128xbf16>
    %cst_14 = arith.constant dense<0.000000e+00> : vector<32x32xf32>
    %28 = tpu.matmul %26, %27, %cst_14 {dimension_numbers = #tpu.dot_dimension_numbers<[1], [1], [0], [0], [0, 0, 1, 0], [], []>} : vector<32x128xbf16>, vector<32x128xbf16>, vector<32x32xf32> -> vector<32x32xf32>
    %cst_15 = arith.constant -1.000000e+30 : f32
    %29 = vector.broadcast %cst_15 : f32 to vector<32x32xf32>
    %30 = arith.select %11, %28, %29 : vector<32x32xi1>, vector<32x32xf32>
    %cst_16 = arith.constant dense<0xFF800000> : vector<32xf32>
    %31 = vector.multi_reduction <maximumf>, %30, %cst_16 [1] : vector<32x32xf32> to vector<32xf32>
    %32 = vector.shape_cast %31 : vector<32xf32> to vector<32x1xf32>
    %33 = vector.broadcast %32 : vector<32x1xf32> to vector<32x32xf32>
    %34 = arith.subf %30, %33 : vector<32x32xf32>
    %35 = math.exp %34 : vector<32x32xf32>
    %cst_17 = arith.constant dense<0.000000e+00> : vector<32xf32>
    %36 = vector.multi_reduction <add>, %35, %cst_17 [1] : vector<32x32xf32> to vector<32xf32>
    %37 = vector.shape_cast %36 : vector<32xf32> to vector<32x1xf32>
    %38 = tpu.reciprocal %37 {approx = true} : vector<32x1xf32> -> vector<32x1xf32>
    %39 = vector.broadcast %38 : vector<32x1xf32> to vector<32x32xf32>
    %40 = arith.mulf %35, %39 : vector<32x32xf32>
    %41 = arith.truncf %40 : vector<32x32xf32> to vector<32x32xbf16>
    %42 = arith.truncf %25 : vector<32x128xf32> to vector<32x128xbf16>
    %cst_18 = arith.constant dense<0.000000e+00> : vector<32x128xf32>
    %43 = tpu.matmul %41, %42, %cst_18 {dimension_numbers = #tpu.dot_dimension_numbers<[1], [0], [0], [1], [0, 0, 1, 1], [], []>} : vector<32x32xbf16>, vector<32x128xbf16>, vector<32x128xf32> -> vector<32x128xf32>
    %44 = arith.truncf %43 : vector<32x128xf32> to vector<32x128xbf16>
    %45 = vector.extract_strided_slice %21 {offsets = [0, 0], sizes = [128, 8], strides = [1, 1]} : vector<256x8xbf16> to vector<128x8xbf16>
    %cst_19 = arith.constant dense<0.000000e+00> : vector<32x8xf32>
    %46 = tpu.matmul %44, %45, %cst_19 {dimension_numbers = #tpu.dot_dimension_numbers<[1], [0], [0], [1], [0, 0, 1, 1], [], []>} : vector<32x128xbf16>, vector<128x8xbf16>, vector<32x8xf32> -> vector<32x8xf32>
    %47 = arith.addf %22, %46 : vector<32x8xf32>
    %48 = vector.extract_strided_slice %19 {offsets = [0, 128], sizes = [32, 128], strides = [1, 1]} : vector<32x768xf32> to vector<32x128xf32>
    %49 = vector.extract_strided_slice %19 {offsets = [0, 384], sizes = [32, 128], strides = [1, 1]} : vector<32x768xf32> to vector<32x128xf32>
    %50 = vector.extract_strided_slice %19 {offsets = [0, 640], sizes = [32, 128], strides = [1, 1]} : vector<32x768xf32> to vector<32x128xf32>
    %51 = arith.truncf %48 : vector<32x128xf32> to vector<32x128xbf16>
    %52 = arith.truncf %49 : vector<32x128xf32> to vector<32x128xbf16>
    %cst_20 = arith.constant dense<0.000000e+00> : vector<32x32xf32>
    %53 = tpu.matmul %51, %52, %cst_20 {dimension_numbers = #tpu.dot_dimension_numbers<[1], [1], [0], [0], [0, 0, 1, 0], [], []>} : vector<32x128xbf16>, vector<32x128xbf16>, vector<32x32xf32> -> vector<32x32xf32>
    %cst_21 = arith.constant -1.000000e+30 : f32
    %54 = vector.broadcast %cst_21 : f32 to vector<32x32xf32>
    %55 = arith.select %11, %53, %54 : vector<32x32xi1>, vector<32x32xf32>
    %cst_22 = arith.constant dense<0xFF800000> : vector<32xf32>
    %56 = vector.multi_reduction <maximumf>, %55, %cst_22 [1] : vector<32x32xf32> to vector<32xf32>
    %57 = vector.shape_cast %56 : vector<32xf32> to vector<32x1xf32>
    %58 = vector.broadcast %57 : vector<32x1xf32> to vector<32x32xf32>
    %59 = arith.subf %55, %58 : vector<32x32xf32>
    %60 = math.exp %59 : vector<32x32xf32>
    %cst_23 = arith.constant dense<0.000000e+00> : vector<32xf32>
    %61 = vector.multi_reduction <add>, %60, %cst_23 [1] : vector<32x32xf32> to vector<32xf32>
    %62 = vector.shape_cast %61 : vector<32xf32> to vector<32x1xf32>
    %63 = tpu.reciprocal %62 {approx = true} : vector<32x1xf32> -> vector<32x1xf32>
    %64 = vector.broadcast %63 : vector<32x1xf32> to vector<32x32xf32>
    %65 = arith.mulf %60, %64 : vector<32x32xf32>
    %66 = arith.truncf %65 : vector<32x32xf32> to vector<32x32xbf16>
    %67 = arith.truncf %50 : vector<32x128xf32> to vector<32x128xbf16>
    %cst_24 = arith.constant dense<0.000000e+00> : vector<32x128xf32>
    %68 = tpu.matmul %66, %67, %cst_24 {dimension_numbers = #tpu.dot_dimension_numbers<[1], [0], [0], [1], [0, 0, 1, 1], [], []>} : vector<32x32xbf16>, vector<32x128xbf16>, vector<32x128xf32> -> vector<32x128xf32>
    %69 = arith.truncf %68 : vector<32x128xf32> to vector<32x128xbf16>
    %70 = vector.extract_strided_slice %21 {offsets = [128, 0], sizes = [128, 8], strides = [1, 1]} : vector<256x8xbf16> to vector<128x8xbf16>
    %cst_25 = arith.constant dense<0.000000e+00> : vector<32x8xf32>
    %71 = tpu.matmul %69, %70, %cst_25 {dimension_numbers = #tpu.dot_dimension_numbers<[1], [0], [0], [1], [0, 0, 1, 1], [], []>} : vector<32x128xbf16>, vector<128x8xbf16>, vector<32x8xf32> -> vector<32x8xf32>
    %72 = arith.addf %47, %71 : vector<32x8xf32>
    %c0_26 = arith.constant 0 : index
    %c0_27 = arith.constant 0 : index
    %c0_28 = arith.constant 0 : index
    %73 = vector.load %arg6[%c0_26, %c0_27, %c0_28] : memref<1x1x8xf32, #tpu.memory_space<vmem>>, vector<1x1x8xf32>
    %74 = vector.shape_cast %73 : vector<1x1x8xf32> to vector<1x8xf32>
    %75 = vector.broadcast %74 : vector<1x8xf32> to vector<32x8xf32>
    %76 = arith.addf %72, %75 : vector<32x8xf32>
    %77 = arith.addf %3, %76 : vector<32x8xf32>
    %cst_29 = arith.constant dense<0.000000e+00> : vector<32xf32>
    %78 = vector.multi_reduction <add>, %77, %cst_29 [1] : vector<32x8xf32> to vector<32xf32>
    %79 = vector.shape_cast %78 : vector<32xf32> to vector<32x1xf32>
    %cst_30 = arith.constant 8.000000e+00 : f32
    %80 = vector.broadcast %cst_30 : f32 to vector<32x1xf32>
    %81 = arith.divf %79, %80 : vector<32x1xf32>
    %82 = vector.broadcast %81 : vector<32x1xf32> to vector<32x8xf32>
    %83 = arith.subf %77, %82 : vector<32x8xf32>
    %84 = vector.broadcast %81 : vector<32x1xf32> to vector<32x8xf32>
    %85 = arith.subf %77, %84 : vector<32x8xf32>
    %86 = arith.mulf %83, %85 : vector<32x8xf32>
    %cst_31 = arith.constant dense<0.000000e+00> : vector<32xf32>
    %87 = vector.multi_reduction <add>, %86, %cst_31 [1] : vector<32x8xf32> to vector<32xf32>
    %88 = vector.shape_cast %87 : vector<32xf32> to vector<32x1xf32>
    %cst_32 = arith.constant 8.000000e+00 : f32
    %89 = vector.broadcast %cst_32 : f32 to vector<32x1xf32>
    %90 = arith.divf %88, %89 : vector<32x1xf32>
    %91 = vector.broadcast %81 : vector<32x1xf32> to vector<32x8xf32>
    %92 = arith.subf %77, %91 : vector<32x8xf32>
    %cst_33 = arith.constant 9.99999974E-6 : f32
    %93 = vector.broadcast %cst_33 : f32 to vector<32x1xf32>
    %94 = arith.addf %90, %93 : vector<32x1xf32>
    %95 = math.rsqrt %94 : vector<32x1xf32>
    %96 = vector.broadcast %95 : vector<32x1xf32> to vector<32x8xf32>
    %97 = arith.mulf %92, %96 : vector<32x8xf32>
    %c0_34 = arith.constant 0 : index
    %c0_35 = arith.constant 0 : index
    %c0_36 = arith.constant 0 : index
    %98 = vector.load %arg7[%c0_34, %c0_35, %c0_36] : memref<1x1x8xf32, #tpu.memory_space<vmem>>, vector<1x1x8xf32>
    %99 = vector.shape_cast %98 : vector<1x1x8xf32> to vector<1x8xf32>
    %100 = vector.broadcast %99 : vector<1x8xf32> to vector<32x8xf32>
    %101 = arith.mulf %97, %100 : vector<32x8xf32>
    %c0_37 = arith.constant 0 : index
    %c0_38 = arith.constant 0 : index
    %c0_39 = arith.constant 0 : index
    %102 = vector.load %arg8[%c0_37, %c0_38, %c0_39] : memref<1x1x8xf32, #tpu.memory_space<vmem>>, vector<1x1x8xf32>
    %103 = vector.shape_cast %102 : vector<1x1x8xf32> to vector<1x8xf32>
    %104 = vector.broadcast %103 : vector<1x8xf32> to vector<32x8xf32>
    %105 = arith.addf %101, %104 : vector<32x8xf32>
    %106 = arith.truncf %105 : vector<32x8xf32> to vector<32x8xbf16>
    %c0_40 = arith.constant 0 : index
    %c0_41 = arith.constant 0 : index
    %c0_42 = arith.constant 0 : index
    %107 = vector.load %arg9[%c0_40, %c0_41, %c0_42] : memref<1x8x32xbf16, #tpu.memory_space<vmem>>, vector<1x8x32xbf16>
    %108 = vector.shape_cast %107 : vector<1x8x32xbf16> to vector<8x32xbf16>
    %cst_43 = arith.constant dense<0.000000e+00> : vector<32x32xf32>
    %109 = tpu.matmul %106, %108, %cst_43 {dimension_numbers = #tpu.dot_dimension_numbers<[1], [0], [0], [1], [0, 0, 1, 1], [], []>} : vector<32x8xbf16>, vector<8x32xbf16>, vector<32x32xf32> -> vector<32x32xf32>
    %c0_44 = arith.constant 0 : index
    %c0_45 = arith.constant 0 : index
    %c0_46 = arith.constant 0 : index
    %110 = vector.load %arg10[%c0_44, %c0_45, %c0_46] : memref<1x1x32xf32, #tpu.memory_space<vmem>>, vector<1x1x32xf32>
    %111 = vector.shape_cast %110 : vector<1x1x32xf32> to vector<1x32xf32>
    %112 = vector.broadcast %111 : vector<1x32xf32> to vector<32x32xf32>
    %113 = arith.addf %109, %112 : vector<32x32xf32>
    %cst_47 = arith.constant 0.000000e+00 : f32
    %114 = vector.broadcast %cst_47 : f32 to vector<32x32xf32>
    %115 = arith.maximumf %113, %114 : vector<32x32xf32>
    %116 = arith.truncf %115 : vector<32x32xf32> to vector<32x32xbf16>
    %c0_48 = arith.constant 0 : index
    %c0_49 = arith.constant 0 : index
    %c0_50 = arith.constant 0 : index
    %117 = vector.load %arg11[%c0_48, %c0_49, %c0_50] : memref<1x32x8xbf16, #tpu.memory_space<vmem>>, vector<1x32x8xbf16>
    %118 = vector.shape_cast %117 : vector<1x32x8xbf16> to vector<32x8xbf16>
    %cst_51 = arith.constant dense<0.000000e+00> : vector<32x8xf32>
    %119 = tpu.matmul %116, %118, %cst_51 {dimension_numbers = #tpu.dot_dimension_numbers<[1], [0], [0], [1], [0, 0, 1, 1], [], []>} : vector<32x32xbf16>, vector<32x8xbf16>, vector<32x8xf32> -> vector<32x8xf32>
    %c0_52 = arith.constant 0 : index
    %c0_53 = arith.constant 0 : index
    %c0_54 = arith.constant 0 : index
    %120 = vector.load %arg12[%c0_52, %c0_53, %c0_54] : memref<1x1x8xf32, #tpu.memory_space<vmem>>, vector<1x1x8xf32>
    %121 = vector.shape_cast %120 : vector<1x1x8xf32> to vector<1x8xf32>
    %122 = vector.broadcast %121 : vector<1x8xf32> to vector<32x8xf32>
    %123 = arith.addf %119, %122 : vector<32x8xf32>
    %124 = arith.addf %105, %123 : vector<32x8xf32>
    %cst_55 = arith.constant dense<0.000000e+00> : vector<32xf32>
    %125 = vector.multi_reduction <add>, %124, %cst_55 [1] : vector<32x8xf32> to vector<32xf32>
    %126 = vector.shape_cast %125 : vector<32xf32> to vector<32x1xf32>
    %cst_56 = arith.constant 8.000000e+00 : f32
    %127 = vector.broadcast %cst_56 : f32 to vector<32x1xf32>
    %128 = arith.divf %126, %127 : vector<32x1xf32>
    %129 = vector.broadcast %128 : vector<32x1xf32> to vector<32x8xf32>
    %130 = arith.subf %124, %129 : vector<32x8xf32>
    %131 = vector.broadcast %128 : vector<32x1xf32> to vector<32x8xf32>
    %132 = arith.subf %124, %131 : vector<32x8xf32>
    %133 = arith.mulf %130, %132 : vector<32x8xf32>
    %cst_57 = arith.constant dense<0.000000e+00> : vector<32xf32>
    %134 = vector.multi_reduction <add>, %133, %cst_57 [1] : vector<32x8xf32> to vector<32xf32>
    %135 = vector.shape_cast %134 : vector<32xf32> to vector<32x1xf32>
    %cst_58 = arith.constant 8.000000e+00 : f32
    %136 = vector.broadcast %cst_58 : f32 to vector<32x1xf32>
    %137 = arith.divf %135, %136 : vector<32x1xf32>
    %138 = vector.broadcast %128 : vector<32x1xf32> to vector<32x8xf32>
    %139 = arith.subf %124, %138 : vector<32x8xf32>
    %cst_59 = arith.constant 9.99999974E-6 : f32
    %140 = vector.broadcast %cst_59 : f32 to vector<32x1xf32>
    %141 = arith.addf %137, %140 : vector<32x1xf32>
    %142 = math.rsqrt %141 : vector<32x1xf32>
    %143 = vector.broadcast %142 : vector<32x1xf32> to vector<32x8xf32>
    %144 = arith.mulf %139, %143 : vector<32x8xf32>
    %c0_60 = arith.constant 0 : index
    %c0_61 = arith.constant 0 : index
    %c0_62 = arith.constant 0 : index
    %145 = vector.load %arg13[%c0_60, %c0_61, %c0_62] : memref<1x1x8xf32, #tpu.memory_space<vmem>>, vector<1x1x8xf32>
    %146 = vector.shape_cast %145 : vector<1x1x8xf32> to vector<1x8xf32>
    %147 = vector.broadcast %146 : vector<1x8xf32> to vector<32x8xf32>
    %148 = arith.mulf %144, %147 : vector<32x8xf32>
    %c0_63 = arith.constant 0 : index
    %c0_64 = arith.constant 0 : index
    %c0_65 = arith.constant 0 : index
    %149 = vector.load %arg14[%c0_63, %c0_64, %c0_65] : memref<1x1x8xf32, #tpu.memory_space<vmem>>, vector<1x1x8xf32>
    %150 = vector.shape_cast %149 : vector<1x1x8xf32> to vector<1x8xf32>
    %151 = vector.broadcast %150 : vector<1x8xf32> to vector<32x8xf32>
    %152 = arith.addf %148, %151 : vector<32x8xf32>
    %c0_66 = arith.constant 0 : index
    %c0_67 = arith.constant 0 : index
    %153 = vector.load %arg16[%c0_66, %c0_67] : memref<32x8xf32, #tpu.memory_space<vmem>>, vector<32x8xf32>
    tpu.vector_store %arg16[%c0_66, %c0_67], %152 {strides = array<i32>} : memref<32x8xf32, #tpu.memory_space<vmem>>, vector<32x8xf32>,
    %c1_i32 = arith.constant 1 : i32
    %154 = arith.cmpi eq, %arg0, %c1_i32 : i32
    %155 = arith.extui %154 : i1 to i32
    %c0_i32_68 = arith.constant 0 : i32
    %156 = arith.cmpi ne, %155, %c0_i32_68 : i32
    scf.if %156 {
      %c0_69 = arith.constant 0 : index
      %c0_70 = arith.constant 0 : index
      %157 = vector.load %arg15[%c0_69, %c0_70] : memref<32x8xf32, #tpu.memory_space<vmem>>, vector<32x8xf32>
      tpu.vector_store %arg15[%c0_69, %c0_70], %152 {strides = array<i32>} : memref<32x8xf32, #tpu.memory_space<vmem>>, vector<32x8xf32>,
    } else {
    }
    return
  }
  func.func @transform_0(%arg0: i32) -> (i32, i32) {
    %c0_i32 = arith.constant 0 : i32
    %c0_i32_0 = arith.constant 0 : i32
    %c0_i32_1 = arith.constant 0 : i32
    return %c0_i32, %c0_i32_0 : i32, i32
  }
  func.func @transform_1(%arg0: i32) -> (i32, i32) {
    %c0_i32 = arith.constant 0 : i32
    %c0_i32_0 = arith.constant 0 : i32
    %c0_i32_1 = arith.constant 0 : i32
    return %c0_i32, %c0_i32_0 : i32, i32
  }
  func.func @transform_2(%arg0: i32) -> (i32, i32, i32) {
    %c0_i32 = arith.constant 0 : i32
    %c0_i32_0 = arith.constant 0 : i32
    %c0_i32_1 = arith.constant 0 : i32
    return %arg0, %c0_i32, %c0_i32_0 : i32, i32, i32
  }
  func.func @transform_3(%arg0: i32) -> (i32, i32, i32) {
    %c0_i32 = arith.constant 0 : i32
    %c0_i32_0 = arith.constant 0 : i32
    %c0_i32_1 = arith.constant 0 : i32
    return %arg0, %c0_i32, %c0_i32_0 : i32, i32, i32
  }
  func.func @transform_4(%arg0: i32) -> (i32, i32, i32) {
    %c0_i32 = arith.constant 0 : i32
    %c0_i32_0 = arith.constant 0 : i32
    %c0_i32_1 = arith.constant 0 : i32
    return %arg0, %c0_i32, %c0_i32_0 : i32, i32, i32
  }
  func.func @transform_5(%arg0: i32) -> (i32, i32, i32) {
    %c0_i32 = arith.constant 0 : i32
    %c0_i32_0 = arith.constant 0 : i32
    %c0_i32_1 = arith.constant 0 : i32
    return %arg0, %c0_i32, %c0_i32_0 : i32, i32, i32
  }
  func.func @transform_6(%arg0: i32) -> (i32, i32, i32) {
    %c0_i32 = arith.constant 0 : i32
    %c0_i32_0 = arith.constant 0 : i32
    %c0_i32_1 = arith.constant 0 : i32
    return %arg0, %c0_i32, %c0_i32_0 : i32, i32, i32
  }
  func.func @transform_7(%arg0: i32) -> (i32, i32, i32) {
    %c0_i32 = arith.constant 0 : i32
    %c0_i32_0 = arith.constant 0 : i32
    %c0_i32_1 = arith.constant 0 : i32
    return %arg0, %c0_i32, %c0_i32_0 : i32, i32, i32
  }
  func.func @transform_8(%arg0: i32) -> (i32, i32, i32) {
    %c0_i32 = arith.constant 0 : i32
    %c0_i32_0 = arith.constant 0 : i32
    %c0_i32_1 = arith.constant 0 : i32
    return %arg0, %c0_i32, %c0_i32_0 : i32, i32, i32
  }
  func.func @transform_9(%arg0: i32) -> (i32, i32, i32) {
    %c0_i32 = arith.constant 0 : i32
    %c0_i32_0 = arith.constant 0 : i32
    %c0_i32_1 = arith.constant 0 : i32
    return %arg0, %c0_i32, %c0_i32_0 : i32, i32, i32
  }
  func.func @transform_10(%arg0: i32) -> (i32, i32, i32) {
    %c0_i32 = arith.constant 0 : i32
    %c0_i32_0 = arith.constant 0 : i32
    %c0_i32_1 = arith.constant 0 : i32
    return %arg0, %c0_i32, %c0_i32_0 : i32, i32, i32
  }
  func.func @transform_11(%arg0: i32) -> (i32, i32, i32) {
    %c0_i32 = arith.constant 0 : i32
    %c0_i32_0 = arith.constant 0 : i32
    %c0_i32_1 = arith.constant 0 : i32
    return %arg0, %c0_i32, %c0_i32_0 : i32, i32, i32
  }
  func.func @transform_12(%arg0: i32) -> (i32, i32, i32) {
    %c0_i32 = arith.constant 0 : i32
    %c0_i32_0 = arith.constant 0 : i32
    %c0_i32_1 = arith.constant 0 : i32
    return %arg0, %c0_i32, %c0_i32_0 : i32, i32, i32
  }
  func.func @transform_13(%arg0: i32) -> (i32, i32, i32) {
    %c0_i32 = arith.constant 0 : i32
    %c0_i32_0 = arith.constant 0 : i32
    %c0_i32_1 = arith.constant 0 : i32
    return %arg0, %c0_i32, %c0_i32_0 : i32, i32, i32
  }
  func.func @transform_14(%arg0: i32) -> (i32, i32) {
    %c0_i32 = arith.constant 0 : i32
    %c0_i32_0 = arith.constant 0 : i32
    %c0_i32_1 = arith.constant 0 : i32
    return %c0_i32, %c0_i32_0 : i32, i32
  }
}

</mosaic_0001>

<bundles_post_ra>
// kernel: encoder_forward.1
= control target key start
LH: loop header
LB: loop body
LE: loop exit
PB: predicated region body
PF: predicated region fallthrough
CT: control target
= control target key end

     0   :  { %s2293_s29 = smov 0   ;;  %s2592_s0 = inlined_call_operand.vmem [shape: f32[32,8], index: 0, kind: input, shape index: {}]   ;;  %s2593_s1 = inlined_call_operand.vmem [shape: f32[32,8], index: 1, kind: input, shape index: {}]   ;;  %s2594_s2 = inlined_call_operand.vmem [shape: bf16[2,8,768], index: 2, kind: input, shape index: {}]   ;;  %s2595_s3 = inlined_call_operand.vmem [shape: f32[2,1,768], index: 3, kind: input, shape index: {}]   ;;  %s2596_s4 = inlined_call_operand.vmem [shape: bf16[2,256,8], index: 4, kind: input, shape index: {}]   ;;  %s2597_s5 = inlined_call_operand.vmem [shape: f32[2,1,8], index: 5, kind: input, shape index: {}]   ;;  %s2598_s6 = inlined_call_operand.vmem [shape: f32[2,1,8], index: 6, kind: input, shape index: {}]   ;;  %s2599_s7 = inlined_call_operand.vmem [shape: f32[2,1,8], index: 7, kind: input, shape index: {}]   ;;  %s2600_s8 = inlined_call_operand.vmem [shape: bf16[2,8,32], index: 8, kind: input, shape index: {}]   ;;  %s2601_s9 = inlined_call_operand.vmem [shape: f32[2,1,32], index: 9, kind: input, shape index: {}]   ;;  %s2602_s10 = inlined_call_operand.vmem [shape: bf16[2,32,8], index: 10, kind: input, shape index: {}]   ;;  %s2603_s11 = inlined_call_operand.vmem [shape: f32[2,1,8], index: 11, kind: input, shape index: {}]   ;;  %s2604_s12 = inlined_call_operand.vmem [shape: f32[2,1,8], index: 12, kind: input, shape index: {}]   ;;  %s2605_s13 = inlined_call_operand.vmem [shape: f32[2,1,8], index: 13, kind: input, shape index: {}]   ;;  %s2606_s14 = inlined_call_operand.vmem [shape: f32[32,8], index: 14, kind: output, shape index: {}]  }
   0x1   :  { %2611 = sst [smem:[#allocation4_spill]] %s2592_s0 }
   0x2   :  { %2612 = sst [smem:[#allocation5_spill]] %s2593_s1 }
   0x3   :  { %2613 = sst [smem:[#allocation6_spill]] %s2594_s2 }
   0x4   :  { %2614 = sst [smem:[#allocation7_spill]] %s2595_s3 }
   0x5   :  { %2615 = sst [smem:[#allocation8_spill]] %s2596_s4 }
   0x6   :  { %2616 = sst [smem:[#allocation9_spill]] %s2606_s14 }
   0x7 LB: > { %2617 = sst [smem:[#allocation3_spill]] %s2214_s29  ;;  %s2299_s30 = sadd.s32 4294967295, %s2214_s29   ;;  %s2214_s29 = sphi %s2293_s29, %s24_s29  }
   0x8   : > { %p1933_p0 = scmp.ge.s32.totalorder %s2214_s29, 1  ;;  %p501_p1 = scmp.lt.s32.totalorder %s2214_s29, 3 }
   0xa   : > { %p502_p2 = pnand %p1933_p0, %p501_p1 }
   0xb   : > { %p581_p3 = scmp.lt.s32.totalorder (!%p502_p2), %s2299_s30, 1  ;;  %s2618_s4 = sld [smem:[#allocation8_spill]] (!%p502_p2) }
   0xc   : > { %505 = sbr.rel (%p502_p2) target bundleno = 2241 (0x8c1), region = 76  ;;  %s2619_s2 = sld [smem:[#allocation6_spill]] (!%p502_p2) }
   0xd   : > { %s2620_s3 = sld [smem:[#allocation7_spill]] (!%p502_p2)  ;;  %p1940_p4 = scmp.ne.s32.totalorder (!%p502_p2), %s2299_s30, 0 }
  0x11   : > { %s2305_s15 = scalar_select %p581_p3, %s2299_s30, 1 }
  0x12   : > { %s2621_s27 = sld [smem:[#allocation4_spill]] (!%p1940_p4) }
  0x13   : > { %s2124_s16 = smul.u32 24, %s2305_s15  ;;  %s1992_s17 = sshll.u32 %s2305_s15, 7 }
  0x14   : > { %s2125_s18 = smul.u32 6, %s2305_s15  ;;  %s2313_s21 = scalar_lea.vmem %s2618_s4, %s1992_s17 }
  0x15   : > { %s2318_s24 = scalar_lea.vmem %s2619_s2, %s2124_s16  ;;  %s1937_s22 = sshll.u32 %s2305_s15, 2 }
  0x16   : > { %s2327_s14 = scalar_lea.vmem %s2620_s3, %s2125_s18  ;;  %s2341_s2 = scalar_lea.vmem %s2600_s8, %s1937_s22 }
  0x17   : > { %s610_s29 = scalar_lea.vmem %s2601_s9, %s2305_s15  ;;  %s1993_s18 = sshll.u32 %s2305_s15, 4 }
  0x18   : > { %s2355_s17 = scalar_lea.vmem %s2602_s10, %s1993_s18  ;;  %s621_s16 = scalar_lea.vmem %s2604_s12, %s2305_s15 }
  0x19   : > { %s624_s3 = scalar_lea.vmem %s2605_s13, %s2305_s15  ;;  %629 = sbr.rel (%p1940_p4) target bundleno = 37 (0x25), region = 80 }
  0x1a   : > { %s2622_s19 = sld [smem:[#allocation5_spill]] (!%p1940_p4) }
  0x1e   : > { %v630_v0 = vld [vmem:[%s2621_s27] sm:$0xff]  ;;  %vm642_vm0 = vcmask 64512   ;;  %v631_v2 = vld [vmem:[%s2621_s27 + $0x8] sm:$0xff]  ;;  %v632_v5 = vld [vmem:[%s2621_s27 + $0x10] sm:$0xff] }
  0x1f   : > { %v633_v9 = vld [vmem:[%s2621_s27 + $0x18] sm:$0xff] }
  0x20   : > { %v634_v1 = vld [vmem:[%s2622_s19] sm:$0xff]  ;;  %v635_v4 = vld [vmem:[%s2622_s19 + $0x8] sm:$0xff]  ;;  %v636_v6 = vld [vmem:[%s2622_s19 + $0x10] sm:$0xff] }
  0x21   : > { %v638_v3 = vadd.f32 %v634_v1, %v630_v0  ;;  %v639_v7 = vadd.f32 %v635_v4, %v631_v2  ;;  %v640_v8 = vadd.f32 %v636_v6, %v632_v5  ;;  %v637_v10 = vld [vmem:[%s2622_s19 + $0x18] sm:$0xff] }
  0x22   : > { %v641_v11 = vadd.f32 %v637_v10, %v633_v9 }
  0x23   : > { %643 = vst.msk [vmem:[#allocation2] sm:$0xff] %vm642_vm0, %v638_v3  ;;  %644 = vst.msk [vmem:[#allocation2 + $0x8] sm:$0xff] %vm642_vm0, %v639_v7 }
  0x24   : > { %645 = vst.msk [vmem:[#allocation2 + $0x10] sm:$0xff] %vm642_vm0, %v640_v8  ;;  %646 = vst.msk [vmem:[#allocation2 + $0x18] sm:$0xff] %vm642_vm0, %v641_v11 }
  0x25 PF: > { %v674_v12 = vld [vmem:[%s2318_s24 + $0x8] sm:$0xff]  ;;  %vm730_vm1 = vcmask 1043456   ;;  %v2216_v17 = vmov 0   ;;  %v673_v18 = vld [vmem:[%s2318_s24] sm:$0xff]  ;;  %vm723_vm2 = vcmask 64512   ;;  %v675_v27 = vld [vmem:[%s2318_s24 + $0x10] sm:$0xff]  ;;  %v656_v31 = vlaneseq  ;;  %s2627_s24 = scalar_lea.vmem %s2597_s5, %s2305_s15  ;;  %s2628_s20 = scalar_lea.vmem %s2598_s6, %s2305_s15 }
  0x26   : > { %v1944_v15 = vcombine.high %v674_v12, %v674_v12  ;;  %v1943_v16 = vcombine.low %v674_v12, %v674_v12  ;;  %834 = vmatprep.mubr.bf16.mxu1 %v2216_v17  ;;  %781 = vmatprep.mubr.bf16.mxu0 %v2216_v17  ;;  %v1942_v19 = vcombine.high %v673_v18, %v673_v18  ;;  %v2423_v35 = vld [vmem:[%s2327_s14] sm:$0x3f]  ;;  %vm2217_vm4 = vmmov 1   ;;  %s2629_s25 = scalar_lea.vmem %s2599_s7, %s2305_s15  ;;  %s2630_s28 = scalar_lea.vmem %s2603_s11, %s2305_s15 }
  0x27   : > { %v1941_v20 = vcombine.low %v673_v18, %v673_v18  ;;  %v1946_v28 = vcombine.high %v675_v27, %v675_v27  ;;  %v1945_v29 = vcombine.low %v675_v27, %v675_v27  ;;  %v2418_v32 = vshrl.u32 %v656_v31, 7  ;;  %p1989_p5 = scmp.ne.s32.totalorder %s2299_s30, 1 }
  0x28   : > { %1950 = vmatprep.subr.msk.bf16.mxu1 %vm730_vm1, %v1944_v15  ;;  %v738_v21 = vsel %vm730_vm1, %v1943_v16, 0  ;;  %1947 = vmatprep.subr.msk.bf16.mxu0 %vm730_vm1, %v1942_v19  ;;  %vm997_vm7 = vcmask 261120  }
  0x29   : > { %817 = vmatpush1.bf16.msra.mxu1 %v738_v21  ;;  %v732_v23 = vsel %vm730_vm1, %v1941_v20, 0  ;;  %v744_v30 = vsel %vm730_vm1, %v1945_v29, 0  ;;  %v680_v33 = vsub.s32 0, %v2418_v32  ;;  %v684_v34 = vsub.s32 1, %v2418_v32 }
  0x2a   : > { %v2391_v13 = vld [vmem:[#allocation2] sm:$0xff]  ;;  %v2393_v14 = vld [vmem:[#allocation2 + $0x8] sm:$0xff]  ;;  %764 = vmatpush1.bf16.msra.mxu0 %v732_v23  ;;  %v688_v45 = vsub.s32 2, %v2418_v32  ;;  %v692_v53 = vsub.s32 3, %v2418_v32  ;;  %v700_v20 = vsub.s32 5, %v2418_v32 }
  0x2b   : > { %v671_v22 = vpack.c.bf16 %v2393_v14, %v2391_v13  ;;  %v2402_v24 = vld [vmem:[#allocation2 + $0x10] sm:$0xff]  ;;  %v2404_v25 = vld [vmem:[#allocation2 + $0x18] sm:$0xff]  ;;  %1953 = vmatprep.subr.msk.bf16.mxu0 %vm730_vm1, %v1946_v28  ;;  %v681_v37 = vrot.slane %v2423_v35, %v680_v33  ;;  %v685_v40 = vrot.slane %v2423_v35, %v684_v34 }
  0x2c   : > { %v672_v26 = vpack.c.bf16 %v2404_v25, %v2402_v24  ;;  %v689_v54 = vrot.slane %v2423_v35, %v688_v45  ;;  %v693_v58 = vrot.slane %v2423_v35, %v692_v53  ;;  %v701_v21 = vrot.slane %v2423_v35, %v700_v20 }
  0x2d   : > { %1951 = vmatmul.mubr.msk.bf16.vlgmr.msra.gmra.mxu1 %vm723_vm2, %v671_v22  ;;  %1948 = vmatmul.mubr.msk.bf16.vlgmr.msra.gmra.mxu0 %vm723_vm2, %v671_v22 }
  0x2e   : > { %844 = vmatprep.mubr.bf16.mxu1 %v2216_v17  ;;  %791 = vmatprep.mubr.bf16.mxu0 %v2216_v17 }
  0x2f   : > { %870 = vmatpush1.bf16.msra.mxu0 %v744_v30 }
  0x35   : > { %1952 = vmatmul.mubr.msk.bf16.gmra.mxu1 %vm723_vm2, %v672_v26  ;;  %1949 = vmatmul.mubr.msk.bf16.gmra.mxu0 %vm723_vm2, %v672_v26 }
  0x36   : > { %887 = vmatprep.mubr.bf16.mxu0 %v2216_v17 }
  0x3d   : > { %1954 = vmatmul.mubr.msk.bf16.vlgmr.msra.gmra.mxu0 %vm723_vm2, %v671_v22 }
  0x3e   : > { %897 = vmatprep.mubr.bf16.mxu0 %v2216_v17 }
  0x45   : > { %1955 = vmatmul.mubr.msk.bf16.gmra.mxu0 %vm723_vm2, %v672_v26  ;;  %v696_v26 = vsub.s32 4, %v2418_v32 }
  0x47   : > { %v697_v30 = vrot.slane %v2423_v35, %v696_v26  ;;  %v657_v35 = vand.u32 127, %v656_v31 }
  0x49   : > { %vm662_vm3 = vcmp.ge.s32.totalorder %v657_v35, 16 }
  0x4a   : > { %vm665_vm5 = vmxor %vm2217_vm4, %vm662_vm3 }
  0x4b   : > { %vm2441_vm6 = vmxor %vm665_vm5, %vm2217_vm4 }
  0x4c   : > { %vm2445_vm8 = vmxor %vm662_vm3, %vm2217_vm4 }
  0xed   : > { %v836_v36 = vpop.f32.mrf.mxu1  ;;  %v783_v38 = vpop.f32.mrf.mxu0 }
  0xee   : > { %v784_v43 = vadd.f32 %v783_v38, %v681_v37  ;;  %v837_v62 = vadd.f32 %v836_v36, %v689_v54 }
  0xef   : > { %v838_v39 = vpop.f32.mrf.mxu1  ;;  %v785_v41 = vpop.f32.mrf.mxu0 }
  0xf0   : > { %v786_v47 = vadd.f32 %v785_v41, %v685_v40  ;;  %v839_v5 = vadd.f32 %v838_v39, %v693_v58 }
  0xf1   : > { %v840_v42 = vpop.f32.mrf.mxu1  ;;  %v787_v44 = vpop.f32.mrf.mxu0 }
  0xf2   : > { %v788_v48 = vadd.f32 %v787_v44, %v681_v37  ;;  %v841_v59 = vadd.f32 %v840_v42, %v689_v54 }
  0xf3   : > { %v842_v46 = vpop.f32.mrf.mxu1  ;;  %v789_v49 = vpop.f32.mrf.mxu0 }
  0xf4   : > { %v940_v51 = vpack.c.bf16 %v788_v48, %v784_v43  ;;  %v790_v52 = vadd.f32 %v789_v49, %v685_v40  ;;  %v843_v1 = vadd.f32 %v842_v46, %v693_v58  ;;  %v942_v6 = vpack.c.bf16 %v841_v59, %v837_v62 }
  0xf5   : > { %v846_v50 = vpop.f32.mrf.mxu1  ;;  %v793_v0 = vpop.f32.mrf.mxu0 }
  0xf6   : > { %v1103_v56 = vpack.c.bf16 %v790_v52, %v786_v47  ;;  %2041 = vmatprep.mubr.bf16.mxu1 %v940_v51  ;;  %v847_v60 = vadd.f32 %v846_v50, %v689_v54  ;;  %v1105_v9 = vpack.c.bf16 %v843_v1, %v839_v5  ;;  %v794_v12 = vadd.f32 %v793_v0, %v681_v37 }
  0xf7   : > { %v848_v55 = vpop.f32.mrf.mxu1  ;;  %v795_v8 = vpop.f32.mrf.mxu0 }
  0xf8   : > { %2057 = vmatprep.mubr.bf16.mxu0 %v1103_v56  ;;  %v849_v2 = vadd.f32 %v848_v55, %v693_v58  ;;  %v796_v16 = vadd.f32 %v795_v8, %v685_v40 }
  0xf9   : > { %v850_v57 = vpop.f32.mrf.mxu1  ;;  %v797_v10 = vpop.f32.mrf.mxu0 }
  0xfa   : > { %v851_v61 = vadd.f32 %v850_v57, %v689_v54  ;;  %v798_v15 = vadd.f32 %v797_v10, %v681_v37 }
  0xfb   : > { %v852_v63 = vpop.f32.mrf.mxu1  ;;  %v799_v11 = vpop.f32.mrf.mxu0 }
  0xfc   : > { %v943_v3 = vpack.c.bf16 %v851_v61, %v847_v60  ;;  %v853_v4 = vadd.f32 %v852_v63, %v693_v58  ;;  %v800_v17 = vadd.f32 %v799_v11, %v685_v40  ;;  %v941_v18 = vpack.c.bf16 %v798_v15, %v794_v12 }
  0xfd   : > { %v889_v22 = vpop.f32.mrf.mxu0 }
  0xfe   : > { %v1106_v7 = vpack.c.bf16 %v853_v4, %v849_v2  ;;  %2037 = vmatprep.subr.bf16.mxu1 %v943_v3  ;;  %v1104_v19 = vpack.c.bf16 %v800_v17, %v796_v16  ;;  %v890_v38 = vadd.f32 %v889_v22, %v697_v30 }
  0xff   : > { %2038 = vmatpush3.bf16.xpose.msra.mxu1 %v943_v3  ;;  %v891_v23 = vpop.f32.mrf.mxu0 }
 0x100   : > { %2039 = vmatprep.subr.bf16.mxu1 %v942_v6  ;;  %2053 = vmatprep.subr.bf16.mxu0 %v1106_v7  ;;  %v892_v27 = vadd.f32 %v891_v23, %v701_v21 }
 0x101   : > { %2054 = vmatpush3.bf16.xpose.msra.mxu0 %v1106_v7  ;;  %v893_v28 = vpop.f32.mrf.mxu0 }
 0x102   : > { %2055 = vmatprep.subr.bf16.mxu0 %v1105_v9  ;;  %v894_v39 = vadd.f32 %v893_v28, %v697_v30 }
 0x103   : > { %v895_v29 = vpop.f32.mrf.mxu0 }
 0x104   : > { %v896_v33 = vadd.f32 %v895_v29, %v701_v21  ;;  %v1044_v44 = vpack.c.bf16 %v894_v39, %v890_v38 }
 0x105   : > { %v899_v34 = vpop.f32.mrf.mxu0 }
 0x106   : > { %v2435_v36 = vpack.c.bf16 %v896_v33, %v892_v27  ;;  %v900_v40 = vadd.f32 %v899_v34, %v697_v30 }
 0x107   : > { %2040 = vmatpush3.bf16.xpose.msra.mxu1 %v942_v6  ;;  %v901_v37 = vpop.f32.mrf.mxu0 }
 0x108   : > { %v902_v45 = vadd.f32 %v901_v37, %v701_v21 }
 0x109   : > { %2056 = vmatpush3.bf16.xpose.msra.mxu0 %v1105_v9  ;;  %v903_v41 = vpop.f32.mrf.mxu0 }
 0x10a   : > { %v904_v42 = vadd.f32 %v903_v41, %v697_v30 }
 0x10b   : > { %v905_v43 = vpop.f32.mrf.mxu0 }
 0x10c   : > { %v1045_v46 = vpack.c.bf16 %v904_v42, %v900_v40  ;;  %v906_v32 = vadd.f32 %v905_v43, %v701_v21 }
 0x10e   : > { %2042 = vmatmul.mubr.bf16.vlgmr.msra.gmra.mxu1 %v941_v18  ;;  %2045 = vmatprep.subr.bf16.mxu1 %v1045_v46  ;;  %v2437_v47 = vpack.c.bf16 %v906_v32, %v902_v45 }
 0x10f   : > { %2046 = vmatpush3.bf16.msra.mxu1 %v1045_v46 }
 0x110   : > { %2058 = vmatmul.mubr.bf16.vlgmr.msra.gmra.mxu0 %v1104_v19  ;;  %2047 = vmatprep.subr.bf16.mxu1 %v1044_v44 }
 0x113   : > { %2048 = vmatpush3.bf16.msra.mxu1 %v1044_v44 }
 0x114   : > { %2061 = vmatprep.subr.bf16.mxu1 %v2437_v47 }
 0x1ce   : > { %v2043_v49 = vpop.f32.mrf.mxu1 }
 0x1cf   : > { %v995_v51 = vsel %vm2441_vm6, %v2043_v49, -1e+30 }
 0x1d0   : > { %v978_v52 = vpop.f32.mrf.mxu1  ;;  %v2059_v53 = vpop.f32.mrf.mxu0  ;;  %v1004_v31 = vsel %vm997_vm7, %v995_v51, -inf }
 0x1d1   : > { %v993_v54 = vsel %vm2445_vm8, %v978_v52, -1e+30  ;;  %1005 = vmax.xlane.f32.xlu1 %v1004_v31  ;;  %v1158_v6 = vsel %vm2441_vm6, %v2059_v53, -1e+30 }
 0x1d2   : > { %v2044_v55 = vpop.f32.mrf.mxu1  ;;  %v1141_v56 = vpop.f32.mrf.mxu0  ;;  %v998_v57 = vsel %vm997_vm7, %v993_v54, -inf  ;;  %v1166_v8 = vsel %vm997_vm7, %v1158_v6, -inf }
 0x1d3   : > { %v996_v58 = vsel %vm2441_vm6, %v2044_v55, -1e+30  ;;  %999 = vmax.xlane.f32.xlu0 %v998_v57  ;;  %v1156_v1 = vsel %vm2445_vm8, %v1141_v56, -1e+30  ;;  %v2144_v55 = vld [vmem:[%s2313_s21 + $0x78] sm:$0xff]   ;;  %v2146_v56 = vld [vmem:[%s2313_s21 + $0x70] sm:$0xff]  }
 0x1d4   : > { %v981_v59 = vpop.f32.mrf.mxu1  ;;  %v2060_v60 = vpop.f32.mrf.mxu0  ;;  %v1007_v61 = vsel %vm997_vm7, %v996_v58, -inf  ;;  %v1160_v5 = vsel %vm997_vm7, %v1156_v1, -inf  ;;  %2069 = vmatprep.subr.bf16.mxu0 %v2144_v55  ;;  %v2148_v57 = vld [vmem:[%s2313_s21 + $0x68] sm:$0xff]  }
 0x1d5   : > { %v994_v62 = vsel %vm2445_vm8, %v981_v59, -1e+30  ;;  %1008 = vmax.xlane.f32.xlu1 %v1007_v61  ;;  %v1159_v4 = vsel %vm2441_vm6, %v2060_v60, -1e+30  ;;  %2070 = vmatpush3.bf16.msra.mxu0 %v2144_v55 }
 0x1d6   : > { %v1144_v63 = vpop.f32.mrf.mxu0  ;;  %v1001_v0 = vsel %vm997_vm7, %v994_v62, -inf  ;;  %v1169_v7 = vsel %vm997_vm7, %v1159_v4, -inf  ;;  %2071 = vmatprep.subr.bf16.mxu0 %v2146_v56 }
 0x1d7   : > { %v1157_v2 = vsel %vm2445_vm8, %v1144_v63, -1e+30  ;;  %1002 = vmax.xlane.f32.xlu0 %v1001_v0 }
 0x1d8   : > { %v1163_v3 = vsel %vm997_vm7, %v1157_v2, -inf }
 0x1d9   : > { %1164 = vmax.xlane.f32.xlu1 %v1163_v3  ;;  %2072 = vmatpush3.bf16.msra.mxu0 %v2146_v56  ;;  %v1976_v56 = vld [vmem:[%s2627_s24] ss:$0 sm:$0xff] }
 0x1da   : > { %2073 = vmatprep.subr.bf16.mxu0 %v2148_v57 }
 0x1db   : > { %1161 = vmax.xlane.f32.xlu0 %v1160_v5 }
 0x1dd   : > { %1170 = vmax.xlane.f32.xlu1 %v1169_v7  ;;  %2074 = vmatpush3.bf16.msra.mxu0 %v2148_v57 }
 0x1df   : > { %1167 = vmax.xlane.f32.xlu0 %v1166_v8 }
 0x25a   : > { %v1006_v9 = vpop.xlane.xlu1 %1005 }
 0x25b   : > { %v1012_v10 = vsub.f32 %v995_v51, %v1006_v9 }
 0x25c   : > { %v1000_v11 = vpop.xlane.xlu0 %999 }
 0x25d   : > { %v1010_v12 = vsub.f32 %v993_v54, %v1000_v11  ;;  %v1018_v16 = vmul.f32 1.442695, %v1012_v10 }
 0x25e   : > { %v1009_v15 = vpop.xlane.xlu1 %1008 }
 0x25f   : > { %v1014_v17 = vmul.f32 1.442695, %v1010_v12  ;;  %v1013_v18 = vsub.f32 %v996_v58, %v1009_v15  ;;  %v2150_v58 = vld [vmem:[%s2313_s21 + $0x60] sm:$0xff]  }
 0x260   : > { %v1003_v19 = vpop.xlane.xlu0 %1002  ;;  %2075 = vmatprep.subr.bf16.mxu0 %v2150_v58 }
 0x261   : > { %2160 = vpow2.f32 %v1014_v17  ;;  %v1011_v20 = vsub.f32 %v994_v62, %v1003_v19  ;;  %v1020_v22 = vmul.f32 1.442695, %v1013_v18  ;;  %2076 = vmatpush3.bf16.msra.mxu0 %v2150_v58 }
 0x262   : > { %v1165_v21 = vpop.xlane.xlu1 %1164  ;;  %2162 = vpow2.f32 %v1018_v16 }
 0x263   : > { %v1016_v23 = vmul.f32 1.442695, %v1011_v20  ;;  %v1173_v26 = vsub.f32 %v1157_v2, %v1165_v21  ;;  %v2142_v21 = vld [vmem:[%s2313_s21 + $0x38] sm:$0xff]  }
 0x264   : > { %v1162_v27 = vpop.xlane.xlu0 %1161 }
 0x265   : > { %2164 = vpow2.f32 %v1016_v23  ;;  %v1172_v28 = vsub.f32 %v1156_v1, %v1162_v27  ;;  %v1178_v30 = vmul.f32 1.442695, %v1173_v26 }
 0x266   : > { %v1171_v29 = vpop.xlane.xlu1 %1170  ;;  %2166 = vpow2.f32 %v1020_v22 }
 0x267   : > { %v1176_v33 = vmul.f32 1.442695, %v1172_v28  ;;  %v1175_v34 = vsub.f32 %v1159_v4, %v1171_v29  ;;  %v2143_v28 = vld [vmem:[%s2313_s21 + $0x30] sm:$0xff]   ;;  %v2147_v29 = vld [vmem:[%s2313_s21 + $0x20] sm:$0xff]  }
 0x268   : > { %v1168_v37 = vpop.xlane.xlu0 %1167 }
 0x269   : > { %2168 = vpow2.f32 %v1176_v33  ;;  %v1174_v38 = vsub.f32 %v1158_v6, %v1168_v37  ;;  %v1182_v39 = vmul.f32 1.442695, %v1175_v34  ;;  %v2152_v33 = vld [vmem:[%s2313_s21 + $0x58] sm:$0xff]   ;;  %v2153_v34 = vld [vmem:[%s2313_s21 + $0x8] sm:$0xff]   ;;  %v2154_v37 = vld [vmem:[%s2313_s21 + $0x50] sm:$0xff]  }
 0x26a   : > { %2170 = vpow2.f32 %v1178_v30  ;;  %v2149_v30 = vld [vmem:[%s2313_s21 + $0x18] sm:$0xff]   ;;  %2077 = vmatprep.subr.bf16.mxu0 %v2152_v33 }
 0x26b   : > { %v1180_v40 = vmul.f32 1.442695, %v1174_v38  ;;  %2078 = vmatpush3.bf16.msra.mxu0 %v2152_v33  ;;  %v2155_v38 = vld [vmem:[%s2313_s21] sm:$0xff]  }
 0x26c   : > { %2079 = vmatprep.subr.bf16.mxu0 %v2154_v37 }
 0x26d   : > { %2172 = vpow2.f32 %v1180_v40  ;;  %v2157_v40 = vld [vmem:[%s2313_s21 + $0x40] sm:$0xff]  }
 0x26e   : > { %v2161_v41 = vpop.eup %2160  ;;  %2174 = vpow2.f32 %v1182_v39  ;;  %v2156_v39 = vld [vmem:[%s2313_s21 + $0x48] sm:$0xff]  }
 0x26f   : > { %v1022_v42 = vsel %vm997_vm7, %v2161_v41, 0.0  ;;  %v2163_v43 = vpop.eup %2162  ;;  %2080 = vmatpush3.bf16.msra.mxu0 %v2154_v37 }
 0x270   : > { %1023 = vadd.xlane.f32.xlu0 %v1022_v42  ;;  %v1028_v45 = vsel %vm997_vm7, %v2163_v43, 0.0  ;;  %2081 = vmatprep.subr.bf16.mxu0 %v2156_v39 }
 0x272   : > { %v2165_v44 = vpop.eup %2164 }
 0x273   : > { %v1025_v46 = vsel %vm997_vm7, %v2165_v44, 0.0  ;;  %v2167_v32 = vpop.eup %2166  ;;  %2082 = vmatpush3.bf16.msra.mxu0 %v2156_v39 }
 0x274   : > { %1029 = vadd.xlane.f32.xlu0 %v1028_v45  ;;  %1026 = vadd.xlane.f32.xlu1 %v1025_v46  ;;  %v1031_v48 = vsel %vm997_vm7, %v2167_v32, 0.0 }
 0x275   : > { %2083 = vmatprep.subr.bf16.mxu0 %v2157_v40 }
 0x276   : > { %v2169_v35 = vpop.eup %2168 }
 0x277   : > { %v1184_v49 = vsel %vm997_vm7, %v2169_v35, 0.0  ;;  %v2171_v50 = vpop.eup %2170  ;;  %2084 = vmatpush3.bf16.msra.mxu0 %v2157_v40 }
 0x278   : > { %1032 = vadd.xlane.f32.xlu1 %v1031_v48  ;;  %1185 = vadd.xlane.f32.xlu0 %v1184_v49  ;;  %v1187_v52 = vsel %vm997_vm7, %v2171_v50, 0.0 }
 0x27a   : > { %v2173_v51 = vpop.eup %2172 }
 0x27b   : > { %v1190_v53 = vsel %vm997_vm7, %v2173_v51, 0.0  ;;  %v2175_v31 = vpop.eup %2174 }
 0x27c   : > { %1188 = vadd.xlane.f32.xlu1 %v1187_v52  ;;  %1191 = vadd.xlane.f32.xlu0 %v1190_v53  ;;  %v1193_v54 = vsel %vm997_vm7, %v2175_v31, 0.0 }
 0x280   : > { %1194 = vadd.xlane.f32.xlu1 %v1193_v54 }
 0x2f9   : > { %v1024_v59 = vpop.xlane.xlu0 %1023 }
 0x2fa   : > { %2176 = vrcp.f32 %v1024_v59 }
 0x2fd   : > { %v1027_v60 = vpop.xlane.xlu1 %1026  ;;  %v1030_v61 = vpop.xlane.xlu0 %1029 }
 0x2fe   : > { %2178 = vrcp.f32 %v1027_v60 }
 0x2ff   : > { %2180 = vrcp.f32 %v1030_v61 }
 0x301   : > { %v1033_v62 = vpop.xlane.xlu1 %1032  ;;  %v1186_v63 = vpop.xlane.xlu0 %1185 }
 0x302   : > { %2182 = vrcp.f32 %v1033_v62 }
 0x303   : > { %2184 = vrcp.f32 %v1186_v63 }
 0x305   : > { %v1189_v0 = vpop.xlane.xlu1 %1188  ;;  %v1192_v1 = vpop.xlane.xlu0 %1191 }
 0x306   : > { %2186 = vrcp.f32 %v1189_v0 }
 0x307   : > { %2188 = vrcp.f32 %v1192_v1  ;;  %v2177_v2 = vpop.eup %2176 }
 0x308   : > { %v1038_v5 = vmul.f32 %v2177_v2, %v2161_v41 }
 0x309   : > { %v1195_v3 = vpop.xlane.xlu1 %1194 }
 0x30a   : > { %2190 = vrcp.f32 %v1195_v3 }
 0x30b   : > { %v2179_v4 = vpop.eup %2178 }
 0x30c   : > { %v1039_v6 = vmul.f32 %v2179_v4, %v2165_v44  ;;  %v2181_v7 = vpop.eup %2180 }
 0x30d   : > { %v1040_v10 = vmul.f32 %v2181_v7, %v2163_v43 }
 0x30e   : > { %v1042_v8 = vpack.c.bf16 %v1039_v6, %v1038_v5 }
 0x30f   : > { %v2183_v9 = vpop.eup %2182 }
 0x310   : > { %2049 = vmatprep.mubr.msk.bf16.mxu1 %vm997_vm7, %v1042_v8  ;;  %v1041_v11 = vmul.f32 %v2183_v9, %v2167_v32  ;;  %v2185_v12 = vpop.eup %2184 }
 0x311   : > { %v1200_v17 = vmul.f32 %v2185_v12, %v2169_v35 }
 0x312   : > { %v1043_v15 = vpack.c.bf16 %v1041_v11, %v1040_v10 }
 0x313   : > { %v2187_v16 = vpop.eup %2186 }
 0x314   : > { %2050 = vmatmul.mubr.msk.bf16.vlgmr.msra.gmra.mxu1 %vm997_vm7, %v1043_v15  ;;  %v1201_v18 = vmul.f32 %v2187_v16, %v2171_v50  ;;  %v2189_v19 = vpop.eup %2188 }
 0x315   : > { %2062 = vmatpush3.bf16.msra.mxu1 %v2437_v47  ;;  %v1202_v23 = vmul.f32 %v2189_v19, %v2173_v51  ;;  %v2145_v47 = vld [vmem:[%s2313_s21 + $0x28] sm:$0xff]  }
 0x316   : > { %2063 = vmatprep.subr.bf16.mxu1 %v2435_v36  ;;  %v1204_v20 = vpack.c.bf16 %v1201_v18, %v1200_v17 }
 0x317   : > { %v2191_v22 = vpop.eup %2190 }
 0x318   : > { %2065 = vmatprep.mubr.msk.bf16.mxu1 %vm997_vm7, %v1204_v20  ;;  %v1203_v26 = vmul.f32 %v2191_v22, %v2175_v31 }
 0x319   : > { %2064 = vmatpush3.bf16.msra.mxu1 %v2435_v36  ;;  %v2151_v36 = vld [vmem:[%s2313_s21 + $0x10] sm:$0xff]  }
 0x31a   : > { %v1205_v27 = vpack.c.bf16 %v1203_v26, %v1202_v23  ;;  %2089 = vmatprep.subr.bf16.mxu1 %v2142_v21 }
 0x31c   : > { %2066 = vmatmul.mubr.msk.bf16.vlgmr.msra.gmra.mxu1 %vm997_vm7, %v1205_v27 }
 0x31d   : > { %2090 = vmatpush3.bf16.msra.mxu1 %v2142_v21 }
 0x31e   : > { %2091 = vmatprep.subr.bf16.mxu1 %v2143_v28 }
 0x321   : > { %2092 = vmatpush3.bf16.msra.mxu1 %v2143_v28 }
 0x322   : > { %2093 = vmatprep.subr.bf16.mxu1 %v2145_v47 }
 0x325   : > { %2094 = vmatpush3.bf16.msra.mxu1 %v2145_v47 }
 0x326   : > { %2095 = vmatprep.subr.bf16.mxu1 %v2147_v29 }
 0x329   : > { %2096 = vmatpush3.bf16.msra.mxu1 %v2147_v29 }
 0x32a   : > { %2097 = vmatprep.subr.bf16.mxu1 %v2149_v30 }
 0x32d   : > { %2098 = vmatpush3.bf16.msra.mxu1 %v2149_v30 }
 0x32e   : > { %2099 = vmatprep.subr.bf16.mxu1 %v2151_v36 }
 0x331   : > { %2100 = vmatpush3.bf16.msra.mxu1 %v2151_v36  ;;  %v1551_v36 = vld [vmem:[%s2341_s2] sm:$0xf] }
 0x332   : > { %2101 = vmatprep.subr.bf16.mxu1 %v2153_v34  ;;  %2123 = vmatprep.subr.msk.bf16.mxu0 %vm730_vm1, %v1551_v36  ;;  %v1566_v33 = vsel %vm730_vm1, %v1551_v36, 0 }
 0x335   : > { %2102 = vmatpush3.bf16.msra.mxu1 %v2153_v34 }
 0x336   : > { %2103 = vmatprep.subr.bf16.mxu1 %v2155_v38 }
 0x339   : > { %2104 = vmatpush3.bf16.msra.mxu1 %v2155_v38 }
 0x3d4   : > { %v2051_v41 = vpop.f32.mrf.mxu1 }
 0x3d6   : > { %v1086_v42 = vpop.f32.mrf.mxu1 }
 0x3d8   : > { %v2052_v43 = vpop.f32.mrf.mxu1 }
 0x3d9   : > { %v1102_v46 = vpack.c.bf16 %v2052_v43, %v2051_v41 }
 0x3da   : > { %v1089_v44 = vpop.f32.mrf.mxu1 }
 0x3db   : > { %v1101_v45 = vpack.c.bf16 %v1089_v44, %v1086_v42 }
 0x3dc   : > { %v2067_v32 = vpop.f32.mrf.mxu1 }
 0x3dd   : > { %2105 = vmatprep.mubr.bf16.mxu1 %v1101_v45 }
 0x3de   : > { %v1248_v35 = vpop.f32.mrf.mxu1  ;;  %2106 = vmatmul.mubr.bf16.vlgmr.msra.gmra.mxu1 %v1102_v46 }
 0x3e0   : > { %v2068_v48 = vpop.f32.mrf.mxu1 }
 0x3e1   : > { %v1264_v51 = vpack.c.bf16 %v2068_v48, %v2067_v32 }
 0x3e2   : > { %v1251_v49 = vpop.f32.mrf.mxu1 }
 0x3e3   : > { %v1263_v50 = vpack.c.bf16 %v1251_v49, %v1248_v35  ;;  %v1977_v49 = vld [vmem:[%s2628_s20] ss:$0 sm:$0xff] }
 0x3e5   : > { %2085 = vmatprep.mubr.bf16.mxu0 %v1263_v50 }
 0x3e6   : > { %2086 = vmatmul.mubr.bf16.vlgmr.msra.gmra.mxu0 %v1264_v51 }
 0x3e7   : > { %2110 = vmatpush3.bf16.msra.mxu0 %v1566_v33 }
 0x49e   : > { %v2107_v52 = vpop.f32.mrf.mxu1 }
 0x4a0   : > { %v1444_v53 = vpop.f32.mrf.mxu1 }
 0x4a2   : > { %v2108_v55 = vpop.f32.mrf.mxu1 }
 0x4a4   : > { %v1447_v63 = vpop.f32.mrf.mxu1 }
 0x4a6   : > { %v2087_v31 = vpop.f32.mrf.mxu0 }
 0x4a7   : > { %v1453_v54 = vadd.f32 %v2107_v52, %v2087_v31 }
 0x4a8   : > { %v1347_v57 = vpop.f32.mrf.mxu0 }
 0x4a9   : > { %v1445_v58 = vadd.f32 %v1444_v53, %v1347_v57  ;;  %v1468_v60 = vadd.f32 %v1976_v56, %v1453_v54  ;;  %v1978_v54 = vld [vmem:[%s2629_s25] ss:$0 sm:$0xff] }
 0x4aa   : > { %v2088_v59 = vpop.f32.mrf.mxu0 }
 0x4ab   : > { %v1466_v61 = vadd.f32 %v1976_v56, %v1445_v58  ;;  %v1456_v62 = vadd.f32 %v2108_v55, %v2088_v59  ;;  %v1472_v6 = vadd.f32 %v1468_v60, %v2402_v24 }
 0x4ac   : > { %v1350_v0 = vpop.f32.mrf.mxu0 }
 0x4ad   : > { %v1448_v1 = vadd.f32 %v1447_v63, %v1350_v0  ;;  %v1470_v2 = vadd.f32 %v1466_v61, %v2391_v13  ;;  %v1469_v3 = vadd.f32 %v1976_v56, %v1456_v62  ;;  %v1480_v8 = vsel %vm723_vm2, %v1472_v6, 0.0 }
 0x4af   : > { %v1467_v4 = vadd.f32 %v1976_v56, %v1448_v1  ;;  %v1474_v5 = vsel %vm723_vm2, %v1470_v2, 0.0  ;;  %v1473_v10 = vadd.f32 %v1469_v3, %v2404_v25  ;;  %v2159_v3 = vld [vmem:[%s2355_s17] sm:$0xff]  }
 0x4b0   : > { %1475 = vadd.xlane.f32.xlu0 %v1474_v5 }
 0x4b1   : > { %v1471_v7 = vadd.f32 %v1467_v4, %v2393_v14  ;;  %v1483_v11 = vsel %vm723_vm2, %v1473_v10, 0.0 }
 0x4b3   : > { %v1477_v9 = vsel %vm723_vm2, %v1471_v7, 0.0 }
 0x4b4   : > { %1481 = vadd.xlane.f32.xlu0 %v1480_v8  ;;  %1478 = vadd.xlane.f32.xlu1 %v1477_v9 }
 0x4b8   : > { %1484 = vadd.xlane.f32.xlu1 %v1483_v11 }
 0x539   : > { %v1476_v13 = vpop.xlane.xlu0 %1475 }
 0x53a   : > { %v1487_v12 = vmul.f32 0.125, %v1476_v13 }
 0x53c   : > { %v1491_v15 = vsub.f32 %v1470_v2, %v1487_v12  ;;  %v2158_v2 = vld [vmem:[%s2355_s17 + $0x8] sm:$0xff]  }
 0x53d   : > { %v1482_v16 = vpop.xlane.xlu0 %1481  ;;  %v1479_v17 = vpop.xlane.xlu1 %1478  ;;  %2115 = vmatprep.subr.bf16.mxu1 %v2158_v2 }
 0x53e   : > { %v1489_v24 = vmul.f32 0.125, %v1482_v16  ;;  %v1488_v18 = vmul.f32 0.125, %v1479_v17  ;;  %v1495_v19 = vmul.f32 %v1491_v15, %v1491_v15  ;;  %2116 = vmatpush3.bf16.msra.mxu1 %v2158_v2 }
 0x53f   : > { %2117 = vmatprep.subr.bf16.mxu1 %v2159_v3 }
 0x540   : > { %v1493_v14 = vsub.f32 %v1472_v6, %v1489_v24  ;;  %v1492_v20 = vsub.f32 %v1471_v7, %v1488_v18  ;;  %v1499_v21 = vsel %vm723_vm2, %v1495_v19, 0.0  ;;  %v1979_v6 = vld [vmem:[%s610_s29] ss:$0 sm:$0xff] }
 0x541   : > { %1500 = vadd.xlane.f32.xlu0 %v1499_v21  ;;  %v1485_v25 = vpop.xlane.xlu1 %1484 }
 0x542   : > { %v1490_v22 = vmul.f32 0.125, %v1485_v25  ;;  %v1497_v23 = vmul.f32 %v1493_v14, %v1493_v14  ;;  %v1496_v26 = vmul.f32 %v1492_v20, %v1492_v20  ;;  %2118 = vmatpush3.bf16.msra.mxu1 %v2159_v3 }
 0x544   : > { %v1494_v27 = vsub.f32 %v1473_v10, %v1490_v22  ;;  %v1505_v28 = vsel %vm723_vm2, %v1497_v23, 0.0  ;;  %v1502_v47 = vsel %vm723_vm2, %v1496_v26, 0.0 }
 0x545   : > { %1506 = vadd.xlane.f32.xlu0 %v1505_v28  ;;  %1503 = vadd.xlane.f32.xlu1 %v1502_v47 }
 0x546   : > { %v1498_v29 = vmul.f32 %v1494_v27, %v1494_v27 }
 0x548   : > { %v1508_v30 = vsel %vm723_vm2, %v1498_v29, 0.0 }
 0x549   : > { %1509 = vadd.xlane.f32.xlu1 %v1508_v30 }
 0x5ca   : > { %v1501_v34 = vpop.xlane.xlu0 %1500 }
 0x5cb   : > { %v1511_v37 = vmul.f32 0.125, %v1501_v34 }
 0x5cd   : > { %v1515_v38 = vadd.f32 1e-05, %v1511_v37 }
 0x5ce   : > { %v1507_v39 = vpop.xlane.xlu0 %1506  ;;  %v1504_v40 = vpop.xlane.xlu1 %1503 }
 0x5cf   : > { %2192 = vrsqrt.f32 %v1515_v38  ;;  %v1513_v41 = vmul.f32 0.125, %v1507_v39  ;;  %v1512_v42 = vmul.f32 0.125, %v1504_v40 }
 0x5d1   : > { %v1517_v43 = vadd.f32 1e-05, %v1513_v41  ;;  %v1516_v44 = vadd.f32 1e-05, %v1512_v42 }
 0x5d2   : > { %v1510_v45 = vpop.xlane.xlu1 %1509 }
 0x5d3   : > { %2194 = vrsqrt.f32 %v1517_v43  ;;  %v1514_v46 = vmul.f32 0.125, %v1510_v45 }
 0x5d4   : > { %2196 = vrsqrt.f32 %v1516_v44 }
 0x5d5   : > { %v1518_v32 = vadd.f32 1e-05, %v1514_v46 }
 0x5d7   : > { %2198 = vrsqrt.f32 %v1518_v32 }
 0x5dc   : > { %v2193_v35 = vpop.eup %2192 }
 0x5dd   : > { %v1523_v48 = vmul.f32 %v2193_v35, %v1491_v15 }
 0x5df   : > { %v1534_v31 = vmul.f32 %v1977_v49, %v1523_v48 }
 0x5e0   : > { %v2195_v50 = vpop.eup %2194 }
 0x5e1   : > { %v2197_v51 = vpop.eup %2196  ;;  %v1525_v52 = vmul.f32 %v2195_v50, %v1493_v14  ;;  %v1545_v59 = vadd.f32 %v1978_v54, %v1534_v31  ;;  %v1982_v14 = vld [vmem:[%s2630_s28] ss:$0 sm:$0xff] }
 0x5e2   : > { %v1524_v53 = vmul.f32 %v2197_v51, %v1492_v20 }
 0x5e3   : > { %v1536_v58 = vmul.f32 %v1977_v49, %v1525_v52 }
 0x5e4   : > { %v2199_v55 = vpop.eup %2198  ;;  %v1535_v56 = vmul.f32 %v1977_v49, %v1524_v53 }
 0x5e5   : > { %v1526_v57 = vmul.f32 %v2199_v55, %v1494_v27  ;;  %v1547_v63 = vadd.f32 %v1978_v54, %v1536_v58 }
 0x5e6   : > { %v1546_v60 = vadd.f32 %v1978_v54, %v1535_v56 }
 0x5e7   : > { %v1537_v61 = vmul.f32 %v1977_v49, %v1526_v57 }
 0x5e8   : > { %v1549_v62 = vpack.c.bf16 %v1546_v60, %v1545_v59 }
 0x5e9   : > { %v1548_v0 = vadd.f32 %v1978_v54, %v1537_v61 }
 0x5ea   : > { %2111 = vmatprep.mubr.msk.bf16.mxu0 %vm723_vm2, %v1549_v62 }
 0x5eb   : > { %v1550_v1 = vpack.c.bf16 %v1548_v0, %v1547_v63 }
 0x5ed   : > { %2112 = vmatmul.mubr.msk.bf16.vlgmr.msra.gmra.mxu0 %vm723_vm2, %v1550_v1 }
 0x6ad   : > { %v2113_v4 = vpop.f32.mrf.mxu0 }
 0x6ae   : > { %v1611_v10 = vadd.f32 %v2113_v4, %v1979_v6 }
 0x6af   : > { %v1602_v5 = vpop.f32.mrf.mxu0 }
 0x6b0   : > { %v1603_v8 = vadd.f32 %v1979_v6, %v1602_v5  ;;  %v1619_v17 = vmax.f32 %v1611_v10, 0.0  ;;  %v1987_v5 = vld [vmem:[%s621_s16] ss:$0 sm:$0xff]  ;;  %s2631_s16 = sld [smem:[#allocation9_spill]] (!%p1989_p5) }
 0x6b1   : > { %v2114_v7 = vpop.f32.mrf.mxu0 }
 0x6b2   : > { %v1614_v9 = vadd.f32 %v2114_v7, %v1979_v6  ;;  %v1617_v15 = vmax.f32 %v1603_v8, 0.0  ;;  %v1988_v7 = vld [vmem:[%s624_s3] ss:$0 sm:$0xff] }
 0x6b3   : > { %v1605_v11 = vpop.f32.mrf.mxu0 }
 0x6b4   : > { %v1606_v13 = vadd.f32 %v1979_v6, %v1605_v11  ;;  %v1620_v12 = vmax.f32 %v1614_v9, 0.0 }
 0x6b6   : > { %v1618_v16 = vmax.f32 %v1606_v13, 0.0  ;;  %v1622_v18 = vpack.c.bf16 %v1620_v12, %v1619_v17 }
 0x6b8   : > { %v1621_v24 = vpack.c.bf16 %v1618_v16, %v1617_v15 }
 0x6ba   : > { %2119 = vmatprep.mubr.msk.bf16.mxu1 %vm997_vm7, %v1621_v24 }
 0x6bb   : > { %2120 = vmatmul.mubr.msk.bf16.vlgmr.msra.gmra.mxu1 %vm997_vm7, %v1622_v18 }
 0x77b   : > { %v2121_v19 = vpop.f32.mrf.mxu1 }
 0x77c   : > { %v1695_v21 = vadd.f32 %v2121_v19, %v1982_v14 }
 0x77d   : > { %v1686_v20 = vpop.f32.mrf.mxu1 }
 0x77e   : > { %v1687_v25 = vadd.f32 %v1982_v14, %v1686_v20  ;;  %v1703_v29 = vadd.f32 %v1695_v21, %v1547_v63 }
 0x77f   : > { %v2122_v22 = vpop.f32.mrf.mxu1 }
 0x780   : > { %v1701_v23 = vadd.f32 %v1687_v25, %v1545_v59  ;;  %v1698_v27 = vadd.f32 %v2122_v22, %v1982_v14  ;;  %v1711_v33 = vsel %vm723_vm2, %v1703_v29, 0.0 }
 0x781   : > { %v1689_v26 = vpop.f32.mrf.mxu1 }
 0x782   : > { %v1690_v28 = vadd.f32 %v1982_v14, %v1689_v26  ;;  %v1705_v47 = vsel %vm723_vm2, %v1701_v23, 0.0  ;;  %v1704_v34 = vadd.f32 %v1698_v27, %v1548_v0 }
 0x783   : > { %1706 = vadd.xlane.f32.xlu0 %v1705_v47 }
 0x784   : > { %v1702_v30 = vadd.f32 %v1690_v28, %v1546_v60  ;;  %v1714_v37 = vsel %vm723_vm2, %v1704_v34, 0.0 }
 0x786   : > { %v1708_v36 = vsel %vm723_vm2, %v1702_v30, 0.0 }
 0x787   : > { %1709 = vadd.xlane.f32.xlu1 %v1708_v36  ;;  %1712 = vadd.xlane.f32.xlu0 %v1711_v33 }
 0x78b   : > { %1715 = vadd.xlane.f32.xlu1 %v1714_v37 }
 0x80c   : > { %v1707_v38 = vpop.xlane.xlu0 %1706 }
 0x80d   : > { %v1717_v39 = vmul.f32 0.125, %v1707_v38 }
 0x80f   : > { %v1721_v40 = vsub.f32 %v1701_v23, %v1717_v39 }
 0x810   : > { %v1710_v41 = vpop.xlane.xlu1 %1709  ;;  %v1713_v42 = vpop.xlane.xlu0 %1712 }
 0x811   : > { %v1718_v43 = vmul.f32 0.125, %v1710_v41  ;;  %v1719_v44 = vmul.f32 0.125, %v1713_v42  ;;  %v1725_v45 = vmul.f32 %v1721_v40, %v1721_v40 }
 0x813   : > { %v1722_v46 = vsub.f32 %v1702_v30, %v1718_v43  ;;  %v1723_v32 = vsub.f32 %v1703_v29, %v1719_v44  ;;  %v1729_v35 = vsel %vm723_vm2, %v1725_v45, 0.0 }
 0x814   : > { %v1716_v48 = vpop.xlane.xlu1 %1715  ;;  %1730 = vadd.xlane.f32.xlu0 %v1729_v35 }
 0x815   : > { %v1720_v49 = vmul.f32 0.125, %v1716_v48  ;;  %v1726_v50 = vmul.f32 %v1722_v46, %v1722_v46  ;;  %v1727_v51 = vmul.f32 %v1723_v32, %v1723_v32 }
 0x817   : > { %v1724_v52 = vsub.f32 %v1704_v34, %v1720_v49  ;;  %v1732_v53 = vsel %vm723_vm2, %v1726_v50, 0.0  ;;  %v1735_v31 = vsel %vm723_vm2, %v1727_v51, 0.0 }
 0x818   : > { %1733 = vadd.xlane.f32.xlu1 %v1732_v53  ;;  %1736 = vadd.xlane.f32.xlu0 %v1735_v31 }
 0x819   : > { %v1728_v54 = vmul.f32 %v1724_v52, %v1724_v52 }
 0x81b   : > { %v1738_v55 = vsel %vm723_vm2, %v1728_v54, 0.0 }
 0x81c   : > { %1739 = vadd.xlane.f32.xlu1 %v1738_v55 }
 0x89d   : > { %v1731_v56 = vpop.xlane.xlu0 %1730 }
 0x89e   : > { %v1741_v57 = vmul.f32 0.125, %v1731_v56 }
 0x8a0   : > { %v1745_v58 = vadd.f32 1e-05, %v1741_v57 }
 0x8a1   : > { %v1734_v59 = vpop.xlane.xlu1 %1733  ;;  %v1737_v60 = vpop.xlane.xlu0 %1736 }
 0x8a2   : > { %2200 = vrsqrt.f32 %v1745_v58  ;;  %v1742_v61 = vmul.f32 0.125, %v1734_v59  ;;  %v1743_v62 = vmul.f32 0.125, %v1737_v60 }
 0x8a4   : > { %v1746_v63 = vadd.f32 1e-05, %v1742_v61  ;;  %v1747_v0 = vadd.f32 1e-05, %v1743_v62 }
 0x8a5   : > { %v1740_v1 = vpop.xlane.xlu1 %1739 }
 0x8a6   : > { %2202 = vrsqrt.f32 %v1746_v63  ;;  %v1744_v2 = vmul.f32 0.125, %v1740_v1 }
 0x8a7   : > { %2204 = vrsqrt.f32 %v1747_v0 }
 0x8a8   : > { %v1748_v3 = vadd.f32 1e-05, %v1744_v2 }
 0x8aa   : > { %2206 = vrsqrt.f32 %v1748_v3 }
 0x8af   : > { %v2201_v4 = vpop.eup %2200 }
 0x8b0   : > { %v1753_v6 = vmul.f32 %v2201_v4, %v1721_v40 }
 0x8b2   : > { %v1764_v8 = vmul.f32 %v1987_v5, %v1753_v6 }
 0x8b3   : > { %v2203_v9 = vpop.eup %2202 }
 0x8b4   : > { %v2205_v10 = vpop.eup %2204  ;;  %v1775_v11 = vadd.f32 %v1988_v7, %v1764_v8  ;;  %v1754_v13 = vmul.f32 %v2203_v9, %v1722_v46 }
 0x8b5   : > { %v1755_v12 = vmul.f32 %v2205_v10, %v1723_v32 }
 0x8b6   : > { %1779 = vst.msk [vmem:[#allocation2] sm:$0xff] %vm723_vm2, %v1775_v11  ;;  %v1765_v15 = vmul.f32 %v1987_v5, %v1754_v13 }
 0x8b7   : > { %v2207_v16 = vpop.eup %2206  ;;  %v1766_v17 = vmul.f32 %v1987_v5, %v1755_v12 }
 0x8b8   : > { %v1776_v24 = vadd.f32 %v1988_v7, %v1765_v15  ;;  %v1756_v18 = vmul.f32 %v2207_v16, %v1724_v52 }
 0x8b9   : > { %v1777_v19 = vadd.f32 %v1988_v7, %v1766_v17 }
 0x8ba   : > { %1780 = vst.msk [vmem:[#allocation2 + $0x8] sm:$0xff] %vm723_vm2, %v1776_v24  ;;  %v1767_v14 = vmul.f32 %v1987_v5, %v1756_v18  ;;  %1786 = sbr.rel (%p1989_p5) target bundleno = 2241 (0x8c1), region = 84 }
 0x8bb   : > { %1781 = vst.msk [vmem:[#allocation2 + $0x10] sm:$0xff] %vm723_vm2, %v1777_v19 }
 0x8bc   : > { %v1778_v20 = vadd.f32 %v1988_v7, %v1767_v14 }
 0x8be   : > { %1782 = vst.msk [vmem:[#allocation2 + $0x18] sm:$0xff] %vm723_vm2, %v1778_v20 }
 0x8bf   : > { %1787 = vst.msk [vmem:[%s2631_s16] sm:$0xff] %vm723_vm2, %v1775_v11  ;;  %1788 = vst.msk [vmem:[%s2631_s16 + $0x8] sm:$0xff] %vm723_vm2, %v1776_v24 }
 0x8c0   : > { %1789 = vst.msk [vmem:[%s2631_s16 + $0x10] sm:$0xff] %vm723_vm2, %v1777_v19  ;;  %1790 = vst.msk [vmem:[%s2631_s16 + $0x18] sm:$0xff] %vm723_vm2, %v1778_v20 }
 0x8c1 PF: > { %s2632_s30 = sld [smem:[#allocation3_spill]] }
 0x8c7   : > { %s24_s29 = sadd.s32 1, %s2632_s30  }
 0x8c8   : > { %p21_p6 = scmp.ge.s32.totalorder %s24_s29, 4  }
 0x8ca   :  { %23 = sbr.rel (!%p21_p6) target bundleno = 7 (0x7), region = 143 }

</bundles_post_ra>
